<compile_context>
chip_gen: v7x
topology: tpu7x:2x2x1
jax: 0.10.0
libtpu: 0.0.40
codegen_flags: <defaults>
</compile_context>

<pallas_src>
import jax
import jax.numpy as jnp
from jax.experimental import pallas as pl
from jax.experimental.pallas import tpu as pltpu


def _round_up(n, m):
    return ((n + m - 1) // m) * m


def _make_kernel(chunk):
    def kernel(x_ref, w_ref, b_ref, o_ref):
        # x_ref: (tile_rows, D) native dtype, w_ref: (1, D) same dtype,
        # b_ref: (1,) f32 in SMEM, o_ref: (n_chunks, 1, chunk) f32.
        w = w_ref[...]                     # broadcasts over rows
        b = b_ref[0]                       # scalar bias from SMEM
        n_chunks = o_ref.shape[0]          # static

        def process(c, r):
            xs = x_ref[pl.ds(r, chunk), :]                    # (chunk, D)
            prod = (xs * w).astype(jnp.float32)               # native mul, f32 accum
            y = jnp.sum(prod, axis=-1, keepdims=True) + b     # (chunk, 1) f32
            o_ref[c] = y.reshape(1, chunk)                    # lane-dense row store

        if n_chunks == 1:
            process(0, 0)
        else:
            def body(c, carry):
                process(c, pl.multiple_of(c * chunk, chunk))
                return carry
            jax.lax.fori_loop(0, n_chunks, body, 0)

    return kernel


def svm_forward(x, weight, bias, *,
                x_vmem_budget_bytes=24 << 20,   # double-buffered x tiles
                min_tile_bytes=8 << 20,         # amortize ~0.35us per grid step
                max_tile_rows=None):
    """Forward pass of SVMModel.

    x: (B, D); weight: (1, D) (nn.Linear layout, also accepts (D,)); bias: (1,).
    Returns (B, 1) float32.
    """
    B, D = x.shape
    w = jnp.asarray(weight, dtype=x.dtype).reshape(1, D)     # native-dtype multiply
    b_vec = jnp.asarray(bias, dtype=jnp.float32).reshape(1)  # scalar bias (SMEM)

    itemsize = jnp.dtype(x.dtype).itemsize
    lane_d = _round_up(D, 128)            # lane padding of a (rows, D) VMEM tile
    row_bytes = D * itemsize              # HBM bytes per row
    vrow_bytes = lane_d * itemsize        # VMEM bytes per row (lane padded)

    # Rows processed per inner-loop step; multiple of 128 keeps the output
    # chunk lane-aligned and in-kernel temporaries ~256 KiB.
    chunk = max(128, min(512, (65536 // lane_d) // 128 * 128))

    # Tile rows: as many as the VMEM budget allows, at least the HBM byte
    # floor, and >= 2 tiles when splitting still meets the floor (v7x: 2 TCs).
    tb_cap = max(chunk, (x_vmem_budget_bytes // 2 // vrow_bytes) // chunk * chunk)
    floor_rows = _round_up(pl.cdiv(min_tile_bytes, row_bytes), chunk)
    two_way = _round_up(pl.cdiv(B, 2), chunk)
    tb = min(tb_cap, max(min(floor_rows, _round_up(B, chunk)), two_way))
    if max_tile_rows is not None:
        tb = min(tb, max(chunk, max_tile_rows // chunk * chunk))

    n_chunks = tb // chunk
    grid_b = pl.cdiv(B, tb)

    # Scoped-VMEM limit: double-buffered x + out + weight, plus chunk temps,
    # plus headroom for compiler-internal scratch.
    est = (2 * (tb * vrow_bytes + 8 * tb * 4 + 8 * lane_d * itemsize)
           + 4 * chunk * lane_d * 4)
    vmem_limit = int(est) + (8 << 20)

    out = pl.pallas_call(
        _make_kernel(chunk),
        out_shape=jax.ShapeDtypeStruct((grid_b * n_chunks, 1, chunk), jnp.float32),
        grid=(grid_b,),
        in_specs=[
            pl.BlockSpec((tb, D), lambda i: (i, 0)),                 # x tile (ragged tail OK)
            pl.BlockSpec((1, D), lambda i: (0, 0)),                  # weight row (constant)
            pl.BlockSpec(memory_space=pltpu.MemorySpace.SMEM),       # bias scalar
        ],
        out_specs=pl.BlockSpec((n_chunks, 1, chunk), lambda i: (i, 0, 0)),
        compiler_params=pltpu.CompilerParams(
            dimension_semantics=("parallel",),
            vmem_limit_bytes=vmem_limit,
        ),
    )(x, w, b_vec)

    # Row-major flatten restores original row order; drop padded/garbage tail.
    return out.reshape(-1)[:B].reshape(B, 1)


if __name__ == "__main__":
    key = jax.random.PRNGKey(0)
    kx, kw, kb, kx2 = jax.random.split(key, 4)

    # Small shapes consistent with the module: batch=8, n_features=32.
    B, D = 8, 32
    x = jax.random.normal(kx, (B, D), dtype=jnp.float32)              # "scaled" inputs
    weight = jax.random.normal(kw, (1, D), dtype=jnp.float32) * 0.1   # nn.Linear (out, in)
    bias = jax.random.normal(kb, (1,), dtype=jnp.float32) * 0.1       # nn.Linear (out,)

    out = jax.block_until_ready(svm_forward(x, weight, bias))
    ref = x @ weight.T + bias
    assert out.shape == (B, 1)
    assert jnp.allclose(out, ref, atol=1e-5, rtol=1e-5), "mismatch vs reference (small)"

    # Multi-tile + ragged-tail path (grid of 2, last tile partially out of range).
    B2 = 1000
    x2 = jax.random.normal(kx2, (B2, D), dtype=jnp.float32)
    out2 = jax.block_until_ready(svm_forward(x2, weight, bias, max_tile_rows=512))
    ref2 = x2 @ weight.T + bias
    assert out2.shape == (B2, 1)
    assert jnp.allclose(out2, ref2, atol=1e-4, rtol=1e-5), "mismatch vs reference (tiled)"

    print("KERNEL_OK")
</pallas_src>

<mosaic_0001>
module attributes {stable_mosaic.version = 11 : i64} {
  func.func @kernel(%arg0: i32, %arg1: memref<512x32xf32, #tpu.memory_space<vmem>>, %arg2: memref<1x32xf32, #tpu.memory_space<vmem>>, %arg3: memref<1xf32, #tpu.memory_space<smem>>, %arg4: memref<1x1x512xf32, #tpu.memory_space<vmem>>) attributes {dimension_semantics = [#tpu.dimension_semantics<parallel>], iteration_bounds = array<i64: 1>, scalar_prefetch = 0 : i64, scratch_operands = 0 : i64, tpu.core_type = #tpu.core_type<tc>, window_params = [{transform_indices = @transform_0, window_bounds = array<i64: 512, 32>}, {pipeline_mode = #tpu.pipeline_mode<synchronous>, transform_indices = @transform_1, window_bounds = array<i64: 1, 32>}, {transform_indices = @transform_2, window_bounds = array<i64: 1>}, {transform_indices = @transform_3, window_bounds = array<i64: 1, 1, 512>}]} {
    %c0 = arith.constant 0 : index
    %c0_0 = arith.constant 0 : index
    %0 = vector.load %arg2[%c0, %c0_0] : memref<1x32xf32, #tpu.memory_space<vmem>>, vector<1x32xf32>
    %c0_1 = arith.constant 0 : index
    %1 = memref.load %arg3[%c0_1] : memref<1xf32, #tpu.memory_space<smem>>
    %c0_2 = arith.constant 0 : index
    %c0_3 = arith.constant 0 : index
    %2 = vector.load %arg1[%c0_2, %c0_3] : memref<512x32xf32, #tpu.memory_space<vmem>>, vector<512x32xf32>
    %3 = vector.broadcast %0 : vector<1x32xf32> to vector<512x32xf32>
    %4 = arith.mulf %2, %3 : vector<512x32xf32>
    %cst = arith.constant dense<0.000000e+00> : vector<512xf32>
    %5 = vector.multi_reduction <add>, %4, %cst [1] : vector<512x32xf32> to vector<512xf32>
    %6 = vector.shape_cast %5 : vector<512xf32> to vector<512x1xf32>
    %7 = vector.broadcast %1 : f32 to vector<512x1xf32>
    %8 = arith.addf %6, %7 : vector<512x1xf32>
    %9 = vector.shape_cast %8 : vector<512x1xf32> to vector<1x512xf32>
    %c0_4 = arith.constant 0 : index
    %c0_5 = arith.constant 0 : index
    %c0_6 = arith.constant 0 : index
    %10 = vector.load %arg4[%c0_4, %c0_5, %c0_6] : memref<1x1x512xf32, #tpu.memory_space<vmem>>, vector<1x1x512xf32>
    %11 = vector.shape_cast %10 : vector<1x1x512xf32> to vector<1x512xf32>
    %12 = vector.shape_cast %9 : vector<1x512xf32> to vector<1x1x512xf32>
    tpu.vector_store %arg4[%c0_4, %c0_5, %c0_6], %12 {strides = array<i32>} : memref<1x1x512xf32, #tpu.memory_space<vmem>>, vector<1x1x512xf32>,
    return
  }
  func.func @transform_0(%arg0: i32) -> (i32, i32) {
    %c0_i32 = arith.constant 0 : i32
    %c0_i32_0 = arith.constant 0 : i32
    return %arg0, %c0_i32 : i32, i32
  }
  func.func @transform_1(%arg0: i32) -> (i32, i32) {
    %c0_i32 = arith.constant 0 : i32
    %c0_i32_0 = arith.constant 0 : i32
    %c0_i32_1 = arith.constant 0 : i32
    return %c0_i32, %c0_i32_0 : i32, i32
  }
  func.func @transform_2(%arg0: i32) -> i32 {
    %c0_i32 = arith.constant 0 : i32
    %c0_i32_0 = arith.constant 0 : i32
    return %c0_i32 : i32
  }
  func.func @transform_3(%arg0: i32) -> (i32, i32, i32) {
    %c0_i32 = arith.constant 0 : i32
    %c0_i32_0 = arith.constant 0 : i32
    %c0_i32_1 = arith.constant 0 : i32
    return %arg0, %c0_i32, %c0_i32_0 : i32, i32, i32
  }
}

</mosaic_0001>

<bundles_post_ra>
// kernel: tpu_custom_call.1
= control target key start
LH: loop header
LB: loop body
LE: loop exit
PB: predicated region body
PF: predicated region fallthrough
CT: control target
= control target key end

     0   :  { %9 = vsyncpa [#allocation4], 0  ;;  %s8429_s0 = inlined_call_operand.hbm [shape: f32[8,32], index: 0, kind: input, shape index: {}]   ;;  %s8430_s1 = inlined_call_operand.vmem [shape: f32[1,32], index: 1, kind: input, shape index: {}]   ;;  %s8431_s2 = inlined_call_operand.<no memory space> [shape: f32[1], index: 2, kind: input, shape index: {}]   ;;  %s8432_s3 = inlined_call_operand.hbm [shape: f32[1,1,512], index: 3, kind: output, shape index: {}]  }
   0x1   :  { %10 = vsyncpa [#allocation5], 0 }
   0x2   :  { %15 = vsyncadd [#allocation4], 8064  ;;  %s6314_s12 = smov [#allocation3]   ;;  %s6266_s16 = scalar_lea.hbm %s8429_s0, 128 }
   0x3   :  { %s16_s13 = sshll.u32 %s6314_s12, 4  ;;  %p6267_p0 = scmp.ne.s32.totalorder %s8429_s0, %s6266_s16  ;;  %s17_s13 = int_to_ptr.vmem [resolvable:$true] %s16_s13 }
   0x4   :  { %p6270_p1 = scmp.lt.u32.totalorder %s6266_s16, %s8429_s0 }
   0x6   :  { %p6272_p2 = pnand %p6270_p1, %p6267_p0 }
   0x8   :  { %6275 = shalt.err (!%p6272_p2)
}
   0x9   :  { %s6276_s21 = scalar_lea.vmem %s17_s13, 128  ;;  %s6280_s22 = scalar_lea.vmem %s17_s13, 8192 }
   0xa   :  { %p6277_p3 = scmp.ne.s32.totalorder %s17_s13, %s6276_s21  ;;  %p6281_p4 = scmp.lt.s32.totalorder %s17_s13, %s17_s13 }
   0xb   :  { %p6282_p5 = scmp.lt.s32.totalorder %s6280_s22, %s6276_s21 }
   0xd   :  { %p6283_p6 = por %p6282_p5, %p6281_p4 }
   0xf   :  { %p6284_p7 = pnand %p6283_p6, %p6277_p3 }
  0x11   :  { %6287 = shalt.err (!%p6284_p7)
}
  0x12   :  { %s6315_s23 = smov 128   ;;  %s6316_s24 = smov 8  }
  0x13   :  { %22 = dma.hbm_to_vmem [thread:$0]  %s8429_s0, 128, %s17_s13, [#allocation4], %s6315_s23, %s6315_s23, %s6316_s24  }
  0x14   :  { %6310 = dma.done.wait [#allocation4], 8192  }
  0x15   :  { %6311 = vsyncadd [#allocation4], 4294959104  ;;  %v6355_v0 = vld [vmem:[%s8430_s1] ss:$0 sm:$0xff]  ;;  %v34_v1 = vld [vmem:[#allocation3 + $0x10] sm:$0xff]  ;;  %vm166_vm0 = vcmask 261120  }
  0x16   :  { %v32_v2 = vld [vmem:[#allocation3] sm:$0xff]  ;;  %v104_v3 = vmul.f32 %v6355_v0, %v34_v1  ;;  %v35_v5 = vld [vmem:[#allocation3 + $0x18] sm:$0xff]  ;;  %v33_v6 = vld [vmem:[#allocation3 + $0x8] sm:$0xff]  ;;  %vm5875_vm1 = vcmask 130112   ;;  %vm5882_vm2 = vcmask 195712   ;;  %vm5889_vm3 = vcmask 261312  }
  0x17   :  { %v102_v4 = vmul.f32 %v6355_v0, %v32_v2  ;;  %v105_v7 = vmul.f32 %v6355_v0, %v35_v5  ;;  %v103_v8 = vmul.f32 %v6355_v0, %v33_v6  ;;  %v37_v9 = vld [vmem:[#allocation3 + $0x28] sm:$0xff]  ;;  %v36_v10 = vld [vmem:[#allocation3 + $0x20] sm:$0xff]  ;;  %v39_v17 = vld [vmem:[#allocation3 + $0x38] sm:$0xff]  ;;  %vm5896_vm4 = vcmask 326912  }
  0x18   :  { %v173_v11 = vsel %vm166_vm0, %v104_v3, 0.0  ;;  %v107_v15 = vmul.f32 %v6355_v0, %v37_v9  ;;  %v106_v16 = vmul.f32 %v6355_v0, %v36_v10  ;;  %v38_v18 = vld [vmem:[#allocation3 + $0x30] sm:$0xff]  ;;  %v41_v19 = vld [vmem:[#allocation3 + $0x48] sm:$0xff]  ;;  %v40_v20 = vld [vmem:[#allocation3 + $0x40] sm:$0xff]  ;;  %v109_v26 = vmul.f32 %v6355_v0, %v39_v17 }
  0x19   :  { %v167_v12 = vsel %vm166_vm0, %v102_v4, 0.0  ;;  %174 = vadd.xlane.f32.xlu1 %v173_v11  ;;  %v176_v13 = vsel %vm166_vm0, %v105_v7, 0.0  ;;  %v170_v14 = vsel %vm166_vm0, %v103_v8, 0.0  ;;  %v43_v21 = vld [vmem:[#allocation3 + $0x58] sm:$0xff]  ;;  %v42_v22 = vld [vmem:[#allocation3 + $0x50] sm:$0xff]  ;;  %v45_v23 = vld [vmem:[#allocation3 + $0x68] sm:$0xff]  ;;  %v108_v27 = vmul.f32 %v6355_v0, %v38_v18 }
  0x1a   :  { %168 = vadd.xlane.f32.xlu0 %v167_v12  ;;  %v182_v24 = vsel %vm166_vm0, %v107_v15, 0.0  ;;  %v179_v25 = vsel %vm166_vm0, %v106_v16, 0.0  ;;  %v44_v28 = vld [vmem:[#allocation3 + $0x60] sm:$0xff]  ;;  %v47_v29 = vld [vmem:[#allocation3 + $0x78] sm:$0xff]  ;;  %v46_v30 = vld [vmem:[#allocation3 + $0x70] sm:$0xff]  ;;  %v111_v31 = vmul.f32 %v6355_v0, %v41_v19  ;;  %v110_v32 = vmul.f32 %v6355_v0, %v40_v20 }
  0x1b   :  { %v113_v33 = vmul.f32 %v6355_v0, %v43_v21  ;;  %v112_v34 = vmul.f32 %v6355_v0, %v42_v22  ;;  %v115_v35 = vmul.f32 %v6355_v0, %v45_v23  ;;  %v49_v36 = vld [vmem:[#allocation3 + $0x88] sm:$0xff]  ;;  %v114_v37 = vmul.f32 %v6355_v0, %v44_v28  ;;  %v48_v42 = vld [vmem:[#allocation3 + $0x80] sm:$0xff]  ;;  %v51_v43 = vld [vmem:[#allocation3 + $0x98] sm:$0xff] }
  0x1c   :  { %v117_v38 = vmul.f32 %v6355_v0, %v47_v29  ;;  %v116_v39 = vmul.f32 %v6355_v0, %v46_v30  ;;  %v188_v40 = vsel %vm166_vm0, %v109_v26, 0.0  ;;  %v185_v41 = vsel %vm166_vm0, %v108_v27, 0.0  ;;  %v50_v47 = vld [vmem:[#allocation3 + $0x90] sm:$0xff]  ;;  %v65_v48 = vld [vmem:[#allocation3 + $0x108] sm:$0xff]  ;;  %v64_v49 = vld [vmem:[#allocation3 + $0x100] sm:$0xff] }
  0x1d   :  { %177 = vadd.xlane.f32.xlu1 %v176_v13  ;;  %v194_v44 = vsel %vm166_vm0, %v111_v31, 0.0  ;;  %v191_v45 = vsel %vm166_vm0, %v110_v32, 0.0  ;;  %v119_v46 = vmul.f32 %v6355_v0, %v49_v36  ;;  %v200_v50 = vsel %vm166_vm0, %v113_v33, 0.0  ;;  %v67_v53 = vld [vmem:[#allocation3 + $0x118] sm:$0xff]  ;;  %v66_v54 = vld [vmem:[#allocation3 + $0x110] sm:$0xff]  ;;  %v69_v55 = vld [vmem:[#allocation3 + $0x128] sm:$0xff] }
  0x1e   :  { %171 = vadd.xlane.f32.xlu0 %v170_v14  ;;  %v197_v51 = vsel %vm166_vm0, %v112_v34, 0.0  ;;  %v6387_v52 = vsel %vm166_vm0, %v115_v35, 0.0  ;;  %v6390_v56 = vsel %vm166_vm0, %v114_v37, 0.0  ;;  %v6393_v57 = vsel %vm166_vm0, %v117_v38, 0.0  ;;  %v68_v60 = vld [vmem:[#allocation3 + $0x120] sm:$0xff]  ;;  %v71_v61 = vld [vmem:[#allocation3 + $0x138] sm:$0xff] }
  0x1f   :  { %v6396_v58 = vsel %vm166_vm0, %v116_v39, 0.0  ;;  %v6399_v59 = vmul.f32 %v6355_v0, %v48_v42  ;;  %v6402_v62 = vmul.f32 %v6355_v0, %v51_v43  ;;  %v6405_v63 = vmul.f32 %v6355_v0, %v50_v47  ;;  %v70_v3 = vld [vmem:[#allocation3 + $0x130] sm:$0xff]  ;;  %v73_v8 = vld [vmem:[#allocation3 + $0x148] sm:$0xff]  ;;  %v72_v9 = vld [vmem:[#allocation3 + $0x140] sm:$0xff] }
  0x20   :  { %v135_v1 = vmul.f32 %v6355_v0, %v65_v48  ;;  %v134_v2 = vmul.f32 %v6355_v0, %v64_v49  ;;  %v6410_v4 = vsel %vm166_vm0, %v119_v46, 0.0  ;;  %v137_v5 = vmul.f32 %v6355_v0, %v67_v53  ;;  %v75_v14 = vld [vmem:[#allocation3 + $0x158] sm:$0xff]  ;;  %v74_v15 = vld [vmem:[#allocation3 + $0x150] sm:$0xff]  ;;  %v77_v16 = vld [vmem:[#allocation3 + $0x168] sm:$0xff] }
  0x21   :  { %183 = vadd.xlane.f32.xlu1 %v182_v24  ;;  %v136_v6 = vmul.f32 %v6355_v0, %v66_v54  ;;  %v139_v7 = vmul.f32 %v6355_v0, %v69_v55  ;;  %v138_v12 = vmul.f32 %v6355_v0, %v68_v60  ;;  %v141_v13 = vmul.f32 %v6355_v0, %v71_v61  ;;  %v76_v21 = vld [vmem:[#allocation3 + $0x160] sm:$0xff]  ;;  %v79_v22 = vld [vmem:[#allocation3 + $0x178] sm:$0xff]  ;;  %v78_v27 = vld [vmem:[#allocation3 + $0x170] sm:$0xff] }
  0x22   :  { %180 = vadd.xlane.f32.xlu0 %v179_v25  ;;  %v6416_v10 = vsel %vm166_vm0, %v135_v1, 0.0  ;;  %v6419_v11 = vsel %vm166_vm0, %v134_v2, 0.0  ;;  %v6424_v17 = vsel %vm166_vm0, %v137_v5, 0.0  ;;  %v140_v20 = vmul.f32 %v6355_v0, %v70_v3  ;;  %v81_v32 = vld [vmem:[#allocation3 + $0x188] sm:$0xff]  ;;  %v80_v33 = vld [vmem:[#allocation3 + $0x180] sm:$0xff]  ;;  %v83_v38 = vld [vmem:[#allocation3 + $0x198] sm:$0xff] }
  0x23   :  { %v6427_v18 = vsel %vm166_vm0, %v136_v6, 0.0  ;;  %v6430_v19 = vsel %vm166_vm0, %v139_v7, 0.0  ;;  %v6434_v23 = vsel %vm166_vm0, %v138_v12, 0.0  ;;  %v6437_v24 = vsel %vm166_vm0, %v141_v13, 0.0  ;;  %v82_v39 = vld [vmem:[#allocation3 + $0x190] sm:$0xff]  ;;  %v87_v46 = vld [vmem:[#allocation3 + $0x1b8] sm:$0xff] }
  0x24   :  { %v143_v25 = vmul.f32 %v6355_v0, %v73_v8  ;;  %v142_v26 = vmul.f32 %v6355_v0, %v72_v9  ;;  %v6442_v28 = vsel %vm166_vm0, %v140_v20, 0.0  ;;  %v145_v29 = vmul.f32 %v6355_v0, %v75_v14  ;;  %v89_v61 = vld [vmem:[#allocation3 + $0x1c8] sm:$0xff]  ;;  %v88_v1 = vld [vmem:[#allocation3 + $0x1c0] sm:$0xff]  ;;  %v90_v7 = vld [vmem:[#allocation3 + $0x1d0] sm:$0xff] }
  0x25   :  { %189 = vadd.xlane.f32.xlu1 %v188_v40  ;;  %v144_v30 = vmul.f32 %v6355_v0, %v74_v15  ;;  %v147_v31 = vmul.f32 %v6355_v0, %v77_v16  ;;  %v146_v36 = vmul.f32 %v6355_v0, %v76_v21  ;;  %v149_v37 = vmul.f32 %v6355_v0, %v79_v22  ;;  %v85_v40 = vld [vmem:[#allocation3 + $0x1a8] sm:$0xff]  ;;  %v91_v8 = vld [vmem:[#allocation3 + $0x1d8] sm:$0xff]  ;;  %v92_v9 = vld [vmem:[#allocation3 + $0x1e0] sm:$0xff] }
  0x26   :  { %186 = vadd.xlane.f32.xlu0 %v185_v41  ;;  %v6448_v34 = vsel %vm166_vm0, %v143_v25, 0.0  ;;  %v6451_v35 = vsel %vm166_vm0, %v142_v26, 0.0  ;;  %v6456_v41 = vsel %vm166_vm0, %v145_v29, 0.0  ;;  %v151_v49 = vmul.f32 %v6355_v0, %v81_v32  ;;  %v93_v16 = vld [vmem:[#allocation3 + $0x1e8] sm:$0xff]  ;;  %v94_v20 = vld [vmem:[#allocation3 + $0x1f0] sm:$0xff]  ;;  %v95_v25 = vld [vmem:[#allocation3 + $0x1f8] sm:$0xff] }
  0x27   :  { %v6459_v42 = vsel %vm166_vm0, %v144_v30, 0.0  ;;  %v6462_v43 = vsel %vm166_vm0, %v147_v31, 0.0  ;;  %v6466_v47 = vsel %vm166_vm0, %v146_v36, 0.0  ;;  %v6469_v48 = vsel %vm166_vm0, %v149_v37, 0.0 }
  0x28   :  { %v153_v54 = vmul.f32 %v6355_v0, %v83_v38  ;;  %v152_v55 = vmul.f32 %v6355_v0, %v82_v39  ;;  %v155_v60 = vmul.f32 %v6355_v0, %v85_v40  ;;  %v6480_v2 = vsel %vm166_vm0, %v151_v49, 0.0 }
  0x29   :  { %195 = vadd.xlane.f32.xlu1 %v194_v44  ;;  %v148_v44 = vmul.f32 %v6355_v0, %v78_v27  ;;  %v157_v6 = vmul.f32 %v6355_v0, %v87_v46  ;;  %v158_v22 = vmul.f32 %v6355_v0, %v88_v1  ;;  %v160_v27 = vmul.f32 %v6355_v0, %v90_v7  ;;  %v52_v46 = vld [vmem:[#allocation3 + $0xa0] sm:$0xff] }
  0x2a   :  { %192 = vadd.xlane.f32.xlu0 %v191_v45  ;;  %v84_v45 = vld [vmem:[#allocation3 + $0x1a0] sm:$0xff]  ;;  %v6490_v12 = vsel %vm166_vm0, %v153_v54, 0.0  ;;  %v6493_v13 = vsel %vm166_vm0, %v152_v55, 0.0  ;;  %v6496_v14 = vsel %vm166_vm0, %v155_v60, 0.0  ;;  %v161_v29 = vmul.f32 %v6355_v0, %v91_v8  ;;  %v55_v60 = vld [vmem:[#allocation3 + $0xb8] sm:$0xff] }
  0x2b   :  { %v6474_v53 = vsel %vm166_vm0, %v148_v44, 0.0  ;;  %v154_v5 = vmul.f32 %v6355_v0, %v84_v45  ;;  %v162_v30 = vmul.f32 %v6355_v0, %v92_v9  ;;  %v6517_v32 = vsel %vm166_vm0, %v158_v22, 0.0  ;;  %v56_v7 = vld [vmem:[#allocation3 + $0xc0] sm:$0xff] }
  0x2c   :  { %v164_v36 = vmul.f32 %v6355_v0, %v94_v20  ;;  %v6524_v37 = vsel %vm166_vm0, %v160_v27, 0.0  ;;  %v6527_v38 = vsel %vm166_vm0, %v161_v29, 0.0  ;;  %v165_v40 = vmul.f32 %v6355_v0, %v95_v25  ;;  %v58_v20 = vld [vmem:[#allocation3 + $0xd0] sm:$0xff]  ;;  %v61_v29 = vld [vmem:[#allocation3 + $0xe8] sm:$0xff] }
  0x2d   :  { %201 = vadd.xlane.f32.xlu1 %v200_v50  ;;  %v150_v50 = vmul.f32 %v6355_v0, %v80_v33  ;;  %v6500_v21 = vsel %vm166_vm0, %v154_v5, 0.0  ;;  %v163_v33 = vmul.f32 %v6355_v0, %v93_v16  ;;  %v6530_v39 = vsel %vm166_vm0, %v162_v30, 0.0  ;;  %v59_v16 = vld [vmem:[#allocation3 + $0xd8] sm:$0xff]  ;;  %v60_v30 = vld [vmem:[#allocation3 + $0xe0] sm:$0xff] }
  0x2e   :  { %198 = vadd.xlane.f32.xlu0 %v197_v51  ;;  %v86_v51 = vld [vmem:[#allocation3 + $0x1b0] sm:$0xff]  ;;  %v215_v44 = vsel %vm166_vm0, %v6399_v59, 0.0  ;;  %v6542_v49 = vsel %vm166_vm0, %v165_v40, 0.0  ;;  %v224_v59 = vsel %vm166_vm0, %v6402_v62, 0.0  ;;  %v122_v55 = vmul.f32 %v6355_v0, %v52_v46  ;;  %v57_v62 = vld [vmem:[#allocation3 + $0xc8] sm:$0xff] }
  0x2f   :  { %v6483_v3 = vsel %vm166_vm0, %v150_v50, 0.0  ;;  %v156_v15 = vmul.f32 %v6355_v0, %v86_v51  ;;  %v6536_v45 = vsel %vm166_vm0, %v163_v33, 0.0  ;;  %v6317_v50 = vmov 0   ;;  %v62_v46 = vld [vmem:[#allocation3 + $0xf0] sm:$0xff] }
  0x30   :  { %6264 = vset.pattern.permute.xlu0 %v6317_v50  ;;  %6265 = vset.pattern.permute.xlu1 %v6317_v50  ;;  %v221_v51 = vsel %vm166_vm0, %v6405_v63, 0.0  ;;  %v227_v5 = vsel %vm166_vm0, %v122_v55, 0.0  ;;  %v127_v9 = vmul.f32 %v6355_v0, %v57_v62  ;;  %v129_v25 = vmul.f32 %v6355_v0, %v59_v16 }
  0x31   :  { %207 = vadd.xlane.f32.xlu1 %v6387_v52  ;;  %v6503_v52 = vsel %vm166_vm0, %v157_v6, 0.0  ;;  %v6508_v26 = vsel %vm166_vm0, %v156_v15, 0.0  ;;  %v126_v15 = vmul.f32 %v6355_v0, %v56_v7  ;;  %v128_v27 = vmul.f32 %v6355_v0, %v58_v20 }
  0x32   :  { %204 = vadd.xlane.f32.xlu0 %v6390_v56  ;;  %v159_v56 = vmul.f32 %v6355_v0, %v89_v61  ;;  %v54_v61 = vld [vmem:[#allocation3 + $0xb0] sm:$0xff]  ;;  %v248_v33 = vsel %vm166_vm0, %v129_v25, 0.0  ;;  %v131_v40 = vmul.f32 %v6355_v0, %v61_v29  ;;  %vm5903_vm5 = vcmask 392512  }
  0x33   :  { %v124_v6 = vmul.f32 %v6355_v0, %v54_v61  ;;  %v239_v22 = vsel %vm166_vm0, %v126_v15, 0.0  ;;  %vm5910_vm6 = vcmask 458112   ;;  %vm5917_vm7 = vcmask 523712  }
  0x34   :  { %v6514_v31 = vsel %vm166_vm0, %v159_v56, 0.0  ;;  %v242_v56 = vsel %vm166_vm0, %v127_v9, 0.0  ;;  %v254_v50 = vsel %vm166_vm0, %v131_v40, 0.0  ;;  %vm5924_vm8 = vcmask 589312  }
  0x35   :  { %213 = vadd.xlane.f32.xlu1 %v6393_v57  ;;  %v6539_v57 = vsel %vm166_vm0, %v164_v36, 0.0  ;;  %v233_v8 = vsel %vm166_vm0, %v124_v6, 0.0  ;;  %v245_v36 = vsel %vm166_vm0, %v128_v27, 0.0  ;;  %vm5931_vm9 = vcmask 654912  }
  0x36   :  { %210 = vadd.xlane.f32.xlu0 %v6396_v58  ;;  %v53_v58 = vld [vmem:[#allocation3 + $0xa8] sm:$0xff]  ;;  %vm5938_vm10 = vcmask 720512   ;;  %vm5945_vm11 = vcmask 786112   ;;  %vm5952_vm12 = vcmask 851712   ;;  %vm5959_vm13 = vcmask 917312  }
  0x37   :  { %v123_v54 = vmul.f32 %v6355_v0, %v53_v58  ;;  %v63_v58 = vld [vmem:[#allocation3 + $0xf8] sm:$0xff]  ;;  %vm5966_vm14 = vcmask 982912   ;;  %vm5973_vm15 = vcmask 1048512  }
  0x39   :  { %219 = vadd.xlane.f32.xlu1 %v6410_v4  ;;  %v230_v1 = vsel %vm166_vm0, %v123_v54, 0.0  ;;  %v125_v4 = vmul.f32 %v6355_v0, %v55_v60  ;;  %v132_v54 = vmul.f32 %v6355_v0, %v62_v46 }
  0x3a   :  { %216 = vadd.xlane.f32.xlu0 %v215_v44  ;;  %v130_v44 = vmul.f32 %v6355_v0, %v60_v30 }
  0x3b   :  { %v236_v63 = vsel %vm166_vm0, %v125_v4, 0.0  ;;  %v257_v60 = vsel %vm166_vm0, %v132_v54, 0.0 }
  0x3d   :  { %225 = vadd.xlane.f32.xlu1 %v224_v59  ;;  %v251_v59 = vsel %vm166_vm0, %v130_v44, 0.0 }
  0x3e   :  { %222 = vadd.xlane.f32.xlu0 %v221_v51  ;;  %v133_v51 = vmul.f32 %v6355_v0, %v63_v58  ;;  %v8433_v0 = vlaneseq }
  0x40   :  { %v260_v55 = vsel %vm166_vm0, %v133_v51, 0.0 }
  0x41   :  { %231 = vadd.xlane.f32.xlu1 %v230_v1 }
  0x42   :  { %228 = vadd.xlane.f32.xlu0 %v227_v5 }
  0x45   :  { %237 = vadd.xlane.f32.xlu1 %v236_v63 }
  0x46   :  { %234 = vadd.xlane.f32.xlu0 %v233_v8 }
  0x49   :  { %243 = vadd.xlane.f32.xlu1 %v242_v56 }
  0x4a   :  { %240 = vadd.xlane.f32.xlu0 %v239_v22 }
  0x4d   :  { %249 = vadd.xlane.f32.xlu1 %v248_v33 }
  0x4e   :  { %246 = vadd.xlane.f32.xlu0 %v245_v36 }
  0x51   :  { %255 = vadd.xlane.f32.xlu1 %v254_v50 }
  0x52   :  { %252 = vadd.xlane.f32.xlu0 %v251_v59 }
  0x55   :  { %261 = vadd.xlane.f32.xlu1 %v260_v55 }
  0x56   :  { %258 = vadd.xlane.f32.xlu0 %v257_v60 }
  0x59   :  { %267 = vadd.xlane.f32.xlu1 %v6416_v10  ;;  %v6318_v10 = vmov 1966171168  }
  0x5a   :  { %264 = vadd.xlane.f32.xlu0 %v6419_v11  ;;  %v2541_v11 = vunpack.c.l.s4 %v6318_v10 }
  0x5d   :  { %273 = vadd.xlane.f32.xlu1 %v6424_v17  ;;  %v6606_v17 = vshrl.u32 %v8433_v0, 7 }
  0x5e   :  { %270 = vadd.xlane.f32.xlu0 %v6427_v18  ;;  %v6611_v18 = vstv %s8431_s2  ;;  %s6319_s2 = smov [#allocation6]  }
  0x5f   :  { %s6248_s29 = sshll.u32 %s6319_s2, 4  ;;  %s6249_s29 = int_to_ptr.vmem [resolvable:$true] %s6248_s29 }
  0x60   :  { %s6288_s30 = scalar_lea.vmem %s6249_s29, 64  ;;  %p6293_p9 = scmp.lt.s32.totalorder %s6249_s29, %s6249_s29 }
  0x61   :  { %279 = vadd.xlane.f32.xlu1 %v6430_v19  ;;  %v2542_v19 = vunpack.c.0.s8 %v2541_v11  ;;  %p6289_p8 = scmp.ne.s32.totalorder %s6249_s29, %s6288_s30  ;;  %p6294_p10 = scmp.lt.s32.totalorder %s6288_s30, %s6288_s30 }
  0x62   :  { %276 = vadd.xlane.f32.xlu0 %v6434_v23  ;;  %v6614_v23 = vsub.s32 0, %v6606_v17 }
  0x63   :  { %p6295_p11 = por %p6294_p10, %p6293_p9 }
  0x65   :  { %285 = vadd.xlane.f32.xlu1 %v6437_v24  ;;  %v6617_v24 = vsub.s32 1, %v6606_v17  ;;  %p6296_p12 = pnand %p6295_p11, %p6289_p8 }
  0x66   :  { %282 = vadd.xlane.f32.xlu0 %v6442_v28  ;;  %v6620_v28 = vsub.s32 2, %v6606_v17 }
  0x69   :  { %291 = vadd.xlane.f32.xlu1 %v6448_v34  ;;  %v6623_v34 = vsub.s32 3, %v6606_v17 }
  0x6a   :  { %288 = vadd.xlane.f32.xlu0 %v6451_v35 }
  0x6d   :  { %297 = vadd.xlane.f32.xlu1 %v6456_v41 }
  0x6e   :  { %294 = vadd.xlane.f32.xlu0 %v6459_v42  ;;  %v6626_v42 = vsub.s32 4, %v6606_v17 }
  0x71   :  { %303 = vadd.xlane.f32.xlu1 %v6462_v43  ;;  %v6629_v43 = vsub.s32 5, %v6606_v17 }
  0x72   :  { %300 = vadd.xlane.f32.xlu0 %v6466_v47  ;;  %v6632_v47 = vsub.s32 6, %v6606_v17 }
  0x75   :  { %309 = vadd.xlane.f32.xlu1 %v6469_v48  ;;  %v6635_v48 = vsub.s32 7, %v6606_v17 }
  0x76   :  { %306 = vadd.xlane.f32.xlu0 %v6474_v53 }
  0x79   :  { %315 = vadd.xlane.f32.xlu1 %v6480_v2  ;;  %v6639_v2 = vsub.s32 %v2542_v19, %v6606_v17 }
  0x7a   :  { %312 = vadd.xlane.f32.xlu0 %v6483_v3 }
  0x7b   :  { %8438 = vst [vmem:[#allocation9_spill] sm:$0xff] %v6639_v2 }
  0x7d   :  { %321 = vadd.xlane.f32.xlu1 %v6490_v12 }
  0x7e   :  { %318 = vadd.xlane.f32.xlu0 %v6493_v13 }
  0x81   :  { %327 = vadd.xlane.f32.xlu1 %v6496_v14 }
  0x82   :  { %324 = vadd.xlane.f32.xlu0 %v6500_v21 }
  0x85   :  { %333 = vadd.xlane.f32.xlu1 %v6503_v52 }
  0x86   :  { %330 = vadd.xlane.f32.xlu0 %v6508_v26 }
  0x89   :  { %339 = vadd.xlane.f32.xlu1 %v6514_v31 }
  0x8a   :  { %336 = vadd.xlane.f32.xlu0 %v6517_v32 }
  0x8d   :  { %345 = vadd.xlane.f32.xlu1 %v6527_v38 }
  0x8e   :  { %342 = vadd.xlane.f32.xlu0 %v6524_v37 }
  0x91   :  { %351 = vadd.xlane.f32.xlu1 %v6536_v45 }
  0x92   :  { %348 = vadd.xlane.f32.xlu0 %v6530_v39 }
  0x95   :  { %357 = vadd.xlane.f32.xlu1 %v6542_v49 }
  0x96   :  { %354 = vadd.xlane.f32.xlu0 %v6539_v57 }
  0xa6   :  { %v175_v35 = vpop.xlane.xlu1 %174 }
  0xa7   :  { %v169_v41 = vpop.xlane.xlu0 %168  ;;  %v362_v38 = vadd.f32 %v6611_v18, %v175_v35 }
  0xa8   :  { %v360_v53 = vadd.f32 %v6611_v18, %v169_v41 }
  0xa9   :  { %v555_v20 = vrot.slane %v362_v38, %v6614_v23  ;;  %v559_v56 = vrot.slane %v362_v38, %v6617_v24  ;;  %v563_v40 = vrot.slane %v362_v38, %v6620_v28  ;;  %v567_v59 = vrot.slane %v362_v38, %v6623_v34 }
  0xaa   :  { %v491_v3 = vrot.slane %v360_v53, %v6614_v23  ;;  %v495_v12 = vrot.slane %v360_v53, %v6617_v24  ;;  %v499_v13 = vrot.slane %v360_v53, %v6620_v28  ;;  %v503_v14 = vrot.slane %v360_v53, %v6623_v34  ;;  %v178_v21 = vpop.xlane.xlu1 %177 }
  0xab   :  { %v172_v52 = vpop.xlane.xlu0 %171  ;;  %v507_v26 = vrot.slane %v360_v53, %v6626_v42  ;;  %v511_v31 = vrot.slane %v360_v53, %v6629_v43  ;;  %v515_v32 = vrot.slane %v360_v53, %v6632_v47  ;;  %v519_v37 = vrot.slane %v360_v53, %v6635_v48 }
  0xac   :  { %v361_v39 = vadd.f32 %v6611_v18, %v172_v52  ;;  %v2536_v45 = vcombine.low %v491_v3, %v495_v12  ;;  %v2537_v57 = vcombine.low %v499_v13, %v503_v14  ;;  %v363_v51 = vadd.f32 %v6611_v18, %v178_v21 }
  0xad   :  { %v2538_v49 = vcombine.low %v507_v26, %v511_v31  ;;  %v2539_v61 = vcombine.low %v515_v32, %v519_v37  ;;  %v571_v19 = vrot.slane %v362_v38, %v6626_v42  ;;  %v575_v41 = vrot.slane %v362_v38, %v6629_v43 }
  0xae   :  { %v2546_v1 = vrot.slane %v2536_v45, %v6639_v2  ;;  %v2553_v5 = vrot.slane %v2537_v57, %v6639_v2  ;;  %v523_v4 = vrot.slane %v361_v39, %v6614_v23  ;;  %v527_v6 = vrot.slane %v361_v39, %v6617_v24  ;;  %v184_v62 = vpop.xlane.xlu1 %183 }
  0xaf   :  { %v2560_v7 = vrot.slane %v2538_v49, %v6639_v2  ;;  %v2567_v63 = vrot.slane %v2539_v61, %v6639_v2  ;;  %v531_v8 = vrot.slane %v361_v39, %v6620_v28  ;;  %v535_v9 = vrot.slane %v361_v39, %v6623_v34 }
  0xb0   :  { %v2568_v15 = vcombine.low %v2546_v1, %v2553_v5  ;;  %v539_v16 = vrot.slane %v361_v39, %v6626_v42  ;;  %v543_v25 = vrot.slane %v361_v39, %v6629_v43  ;;  %v547_v27 = vrot.slane %v361_v39, %v6632_v47 }
  0xb1   :  { %v2569_v22 = vcombine.low %v2560_v7, %v2567_v63  ;;  %v551_v29 = vrot.slane %v361_v39, %v6635_v48  ;;  %v2585_v33 = vcombine.low %v523_v4, %v527_v6  ;;  %v2586_v36 = vcombine.low %v531_v8, %v535_v9  ;;  %v181_v8 = vpop.xlane.xlu0 %180 }
  0xb2   :  { %v2576_v30 = vrot.slane %v2568_v15, %v6639_v2  ;;  %v190_v44 = vpop.xlane.xlu1 %189  ;;  %v2587_v46 = vcombine.low %v539_v16, %v543_v25  ;;  %v579_v53 = vrot.slane %v362_v38, %v6632_v47  ;;  %v583_v3 = vrot.slane %v362_v38, %v6635_v48 }
  0xb3   :  { %v2583_v58 = vrot.slane %v2569_v22, %v6639_v2  ;;  %v2588_v50 = vcombine.low %v547_v27, %v551_v29  ;;  %v2595_v54 = vrot.slane %v2585_v33, %v6639_v2  ;;  %v2602_v55 = vrot.slane %v2586_v36, %v6639_v2 }
  0xb4   :  { %v2609_v10 = vrot.slane %v2587_v46, %v6639_v2  ;;  %v2634_v14 = vcombine.low %v555_v20, %v559_v56  ;;  %v2635_v21 = vcombine.low %v563_v40, %v567_v59  ;;  %v2636_v31 = vcombine.low %v571_v19, %v575_v41 }
  0xb5   :  { %v2584_v60 = vcombine.low %v2576_v30, %v2583_v58  ;;  %v2616_v11 = vrot.slane %v2588_v50, %v6639_v2  ;;  %v2617_v35 = vcombine.low %v2595_v54, %v2602_v55  ;;  %v587_v32 = vrot.slane %v363_v51, %v6614_v23 }
  0xb6   :  { %v196_v12 = vpop.xlane.xlu1 %195  ;;  %v2637_v39 = vcombine.low %v579_v53, %v583_v3  ;;  %v2644_v45 = vrot.slane %v2634_v14, %v6639_v2  ;;  %v2651_v57 = vrot.slane %v2635_v21, %v6639_v2  ;;  %v2658_v38 = vrot.slane %v2636_v31, %v6639_v2 }
  0xb7   :  { %5673 = vperm.xlu0 %6264, %v2584_v60   ;;  %v2618_v13 = vcombine.low %v2609_v10, %v2616_v11  ;;  %v369_v52 = vadd.f32 %v6611_v18, %v196_v12  ;;  %v2625_v26 = vrot.slane %v2617_v35, %v6639_v2  ;;  %v591_v49 = vrot.slane %v363_v51, %v6617_v24  ;;  %v187_v11 = vpop.xlane.xlu0 %186 }
  0xb8   :  { %v595_v61 = vrot.slane %v363_v51, %v6620_v28  ;;  %v599_v1 = vrot.slane %v363_v51, %v6623_v34  ;;  %v2665_v4 = vrot.slane %v2637_v39, %v6639_v2  ;;  %v2666_v6 = vcombine.low %v2644_v45, %v2651_v57 }
  0xb9   :  { %v2632_v37 = vrot.slane %v2618_v13, %v6639_v2  ;;  %v603_v7 = vrot.slane %v363_v51, %v6626_v42  ;;  %v6691_v63 = vadd.f32 %v6611_v18, %v184_v62  ;;  %v607_v9 = vrot.slane %v363_v51, %v6629_v43 }
  0xba   :  { %v611_v15 = vrot.slane %v363_v51, %v6632_v47  ;;  %v2667_v16 = vcombine.low %v2658_v38, %v2665_v4  ;;  %v2674_v20 = vrot.slane %v2666_v6, %v6639_v2  ;;  %v615_v56 = vrot.slane %v363_v51, %v6635_v48  ;;  %v202_v51 = vpop.xlane.xlu1 %201 }
  0xbb   :  { %v2633_v5 = vcombine.low %v2625_v26, %v2632_v37  ;;  %v2683_v22 = vcombine.low %v587_v32, %v591_v49  ;;  %v2684_v25 = vcombine.low %v595_v61, %v599_v1  ;;  %v2685_v27 = vcombine.low %v603_v7, %v607_v9  ;;  %v193_v7 = vpop.xlane.xlu0 %192 }
  0xbc   :  { %v779_v29 = vrot.slane %v369_v52, %v6614_v23  ;;  %v783_v30 = vrot.slane %v369_v52, %v6617_v24  ;;  %v2681_v62 = vrot.slane %v2667_v16, %v6639_v2  ;;  %v2686_v33 = vcombine.low %v611_v15, %v615_v56 }
  0xbd   :  { %5676 = vperm.xlu1 %6265, %v2633_v5   ;;  %v2693_v36 = vrot.slane %v2683_v22, %v6639_v2  ;;  %v787_v40 = vrot.slane %v369_v52, %v6620_v28  ;;  %v364_v58 = vadd.f32 %v6611_v18, %v181_v8  ;;  %v6704_v46 = vadd.f32 %v6611_v18, %v190_v44 }
  0xbe   :  { %v2700_v50 = vrot.slane %v2684_v25, %v6639_v2  ;;  %v2707_v59 = vrot.slane %v2685_v27, %v6639_v2  ;;  %v2682_v54 = vcombine.low %v2674_v20, %v2681_v62  ;;  %v2714_v55 = vrot.slane %v2686_v33, %v6639_v2  ;;  %v208_v61 = vpop.xlane.xlu1 %207 }
  0xbf   :  { %v791_v60 = vrot.slane %v369_v52, %v6623_v34  ;;  %v795_v10 = vrot.slane %v369_v52, %v6626_v42  ;;  %v799_v35 = vrot.slane %v369_v52, %v6629_v43  ;;  %v803_v41 = vrot.slane %v369_v52, %v6632_v47 }
  0xc0   :  { %v2715_v19 = vcombine.low %v2693_v36, %v2700_v50  ;;  %v807_v44 = vrot.slane %v369_v52, %v6635_v48  ;;  %v6715_v53 = vadd.f32 %v6611_v18, %v187_v11  ;;  %v2716_v3 = vcombine.low %v2707_v59, %v2714_v55 }
  0xc1   :  { %5679 = vperm.xlu1 %6265, %v2682_v54   ;;  %v2977_v12 = vcombine.low %v779_v29, %v783_v30  ;;  %v2978_v13 = vcombine.low %v787_v40, %v791_v60  ;;  %v371_v14 = vadd.f32 %v6611_v18, %v202_v51  ;;  %v2979_v26 = vcombine.low %v795_v10, %v799_v35 }
  0xc2   :  { %v2723_v21 = vrot.slane %v2715_v19, %v6639_v2  ;;  %v619_v31 = vrot.slane %v364_v58, %v6614_v23  ;;  %v2730_v32 = vrot.slane %v2716_v3, %v6639_v2  ;;  %v2980_v37 = vcombine.low %v803_v41, %v807_v44 }
  0xc3   :  { %v2987_v39 = vrot.slane %v2977_v12, %v6639_v2  ;;  %v2994_v52 = vrot.slane %v2978_v13, %v6639_v2  ;;  %v3001_v45 = vrot.slane %v2979_v26, %v6639_v2  ;;  %v623_v57 = vrot.slane %v364_v58, %v6617_v24 }
  0xc4   :  { %v627_v38 = vrot.slane %v364_v58, %v6620_v28  ;;  %v631_v49 = vrot.slane %v364_v58, %v6623_v34  ;;  %v2731_v1 = vcombine.low %v2723_v21, %v2730_v32  ;;  %v3008_v5 = vrot.slane %v2980_v37, %v6639_v2 }
  0xc5   :  { %v3009_v4 = vcombine.low %v2987_v39, %v2994_v52  ;;  %v635_v6 = vrot.slane %v364_v58, %v6626_v42  ;;  %v639_v8 = vrot.slane %v364_v58, %v6629_v43  ;;  %v643_v9 = vrot.slane %v364_v58, %v6632_v47 }
  0xc6   :  { %v647_v15 = vrot.slane %v364_v58, %v6635_v48  ;;  %v2732_v16 = vcombine.low %v619_v31, %v623_v57  ;;  %v6733_v20 = vadd.f32 %v6611_v18, %v193_v7  ;;  %5682 = vperm.xlu1 %6265, %v2731_v1   ;;  %v3010_v56 = vcombine.low %v3001_v45, %v3008_v5  ;;  %v214_v57 = vpop.xlane.xlu1 %213  ;;  %v199_v5 = vpop.xlane.xlu0 %198 }
  0xc7   :  { %v3017_v22 = vrot.slane %v3009_v4, %v6639_v2  ;;  %v2733_v25 = vcombine.low %v627_v38, %v631_v49  ;;  %v6737_v27 = vadd.f32 %v6611_v18, %v208_v61  ;;  %v2734_v29 = vcombine.low %v635_v6, %v639_v8 }
  0xc8   :  { %v2735_v30 = vcombine.low %v643_v9, %v647_v15  ;;  %v2742_v62 = vrot.slane %v2732_v16, %v6639_v2  ;;  %v3024_v33 = vrot.slane %v3010_v56, %v6639_v2  ;;  %v843_v40 = vrot.slane %v371_v14, %v6614_v23 }
  0xc9   :  { %v2749_v36 = vrot.slane %v2733_v25, %v6639_v2  ;;  %v847_v58 = vrot.slane %v371_v14, %v6617_v24  ;;  %v2756_v50 = vrot.slane %v2734_v29, %v6639_v2  ;;  %v851_v51 = vrot.slane %v371_v14, %v6620_v28 }
  0xca   :  { %v2763_v59 = vrot.slane %v2735_v30, %v6639_v2  ;;  %v855_v54 = vrot.slane %v371_v14, %v6623_v34  ;;  %v3025_v55 = vcombine.low %v3017_v22, %v3024_v33  ;;  %v859_v10 = vrot.slane %v371_v14, %v6626_v42 }
  0xcb   :  { %v2764_v60 = vcombine.low %v2742_v62, %v2749_v36  ;;  %v863_v11 = vrot.slane %v371_v14, %v6629_v43  ;;  %v867_v35 = vrot.slane %v371_v14, %v6632_v47  ;;  %v871_v41 = vrot.slane %v371_v14, %v6635_v48 }
  0xcc   :  { %v2765_v19 = vcombine.low %v2756_v50, %v2763_v59  ;;  %v3075_v44 = vcombine.low %v843_v40, %v847_v58  ;;  %5700 = vperm.xlu0 %6264, %v3025_v55   ;;  %v3076_v12 = vcombine.low %v851_v51, %v855_v54  ;;  %v651_v21 = vrot.slane %v6691_v63, %v6614_v23 }
  0xcd   :  { %v2772_v3 = vrot.slane %v2764_v60, %v6639_v2  ;;  %v3077_v13 = vcombine.low %v859_v10, %v863_v11  ;;  %v3078_v31 = vcombine.low %v867_v35, %v871_v41  ;;  %v655_v37 = vrot.slane %v6691_v63, %v6617_v24 }
  0xce   :  { %v2779_v26 = vrot.slane %v2765_v19, %v6639_v2  ;;  %v3085_v32 = vrot.slane %v3075_v44, %v6639_v2  ;;  %v3092_v39 = vrot.slane %v3076_v12, %v6639_v2  ;;  %v659_v52 = vrot.slane %v6691_v63, %v6620_v28 }
  0xcf   :  { %v3099_v14 = vrot.slane %v3077_v13, %v6639_v2  ;;  %v663_v45 = vrot.slane %v6691_v63, %v6623_v34  ;;  %v3106_v49 = vrot.slane %v3078_v31, %v6639_v2  ;;  %v667_v61 = vrot.slane %v6691_v63, %v6626_v42 }
  0xd0   :  { %v2780_v38 = vcombine.low %v2772_v3, %v2779_v26  ;;  %v671_v1 = vrot.slane %v6691_v63, %v6629_v43  ;;  %v3107_v4 = vcombine.low %v3085_v32, %v3092_v39  ;;  %v675_v6 = vrot.slane %v6691_v63, %v6632_v47 }
  0xd1   :  { %v679_v7 = vrot.slane %v6691_v63, %v6635_v48  ;;  %v2781_v8 = vcombine.low %v651_v21, %v655_v37  ;;  %v6775_v9 = vadd.f32 %v6611_v18, %v199_v5  ;;  %v3108_v15 = vcombine.low %v3099_v14, %v3106_v49  ;;  %v220_v14 = vpop.xlane.xlu1 %219  ;;  %v205_v49 = vpop.xlane.xlu0 %204 }
  0xd2   :  { %5685 = vperm.xlu1 %6265, %v2780_v38   ;;  %v2782_v16 = vcombine.low %v659_v52, %v663_v45  ;;  %v2783_v56 = vcombine.low %v667_v61, %v671_v1  ;;  %v6778_v22 = vadd.f32 %v6611_v18, %v214_v57  ;;  %v3115_v25 = vrot.slane %v3107_v4, %v6639_v2 }
  0xd3   :  { %v2784_v29 = vcombine.low %v675_v6, %v679_v7  ;;  %v2791_v30 = vrot.slane %v2781_v8, %v6639_v2  ;;  %v3122_v62 = vrot.slane %v3108_v15, %v6639_v2  ;;  %v907_v36 = vrot.slane %v6737_v27, %v6614_v23 }
  0xd4   :  { %v2798_v63 = vrot.slane %v2782_v16, %v6639_v2  ;;  %v2805_v33 = vrot.slane %v2783_v56, %v6639_v2  ;;  %v911_v58 = vrot.slane %v6737_v27, %v6617_v24  ;;  %v915_v50 = vrot.slane %v6737_v27, %v6620_v28 }
  0xd5   :  { %v2812_v40 = vrot.slane %v2784_v29, %v6639_v2  ;;  %v919_v59 = vrot.slane %v6737_v27, %v6623_v34  ;;  %v3123_v51 = vcombine.low %v3115_v25, %v3122_v62  ;;  %v923_v55 = vrot.slane %v6737_v27, %v6626_v42 }
  0xd6   :  { %v2813_v54 = vcombine.low %v2791_v30, %v2798_v63  ;;  %v927_v60 = vrot.slane %v6737_v27, %v6629_v43  ;;  %v931_v11 = vrot.slane %v6737_v27, %v6632_v47  ;;  %v935_v19 = vrot.slane %v6737_v27, %v6635_v48 }
  0xd7   :  { %v2814_v10 = vcombine.low %v2805_v33, %v2812_v40  ;;  %v3173_v35 = vcombine.low %v907_v36, %v911_v58  ;;  %5706 = vperm.xlu0 %6264, %v3123_v51   ;;  %v3174_v44 = vcombine.low %v915_v50, %v919_v59  ;;  %v683_v12 = vrot.slane %v6715_v53, %v6614_v23 }
  0xd8   :  { %v2821_v41 = vrot.slane %v2813_v54, %v6639_v2  ;;  %v3175_v3 = vcombine.low %v923_v55, %v927_v60  ;;  %v3176_v21 = vcombine.low %v931_v11, %v935_v19  ;;  %v687_v31 = vrot.slane %v6715_v53, %v6617_v24 }
  0xd9   :  { %v2828_v13 = vrot.slane %v2814_v10, %v6639_v2  ;;  %v3183_v26 = vrot.slane %v3173_v35, %v6639_v2  ;;  %v3190_v32 = vrot.slane %v3174_v44, %v6639_v2  ;;  %v691_v37 = vrot.slane %v6715_v53, %v6620_v28 }
  0xda   :  { %v3197_v27 = vrot.slane %v3175_v3, %v6639_v2  ;;  %v695_v39 = vrot.slane %v6715_v53, %v6623_v34  ;;  %v3204_v45 = vrot.slane %v3176_v21, %v6639_v2  ;;  %v699_v57 = vrot.slane %v6715_v53, %v6626_v42 }
  0xdb   :  { %v2829_v52 = vcombine.low %v2821_v41, %v2828_v13  ;;  %v703_v38 = vrot.slane %v6715_v53, %v6629_v43  ;;  %v3205_v61 = vcombine.low %v3183_v26, %v3190_v32  ;;  %v707_v1 = vrot.slane %v6715_v53, %v6632_v47 }
  0xdc   :  { %v711_v5 = vrot.slane %v6715_v53, %v6635_v48  ;;  %v2830_v4 = vcombine.low %v683_v12, %v687_v31  ;;  %v6825_v6 = vadd.f32 %v6611_v18, %v205_v49  ;;  %v3206_v7 = vcombine.low %v3197_v27, %v3204_v45  ;;  %v226_v27 = vpop.xlane.xlu1 %225  ;;  %v211_v45 = vpop.xlane.xlu0 %210 }
  0xdd   :  { %5688 = vperm.xlu1 %6265, %v2829_v52   ;;  %v2831_v8 = vcombine.low %v691_v37, %v695_v39  ;;  %v2832_v15 = vcombine.low %v699_v57, %v703_v38  ;;  %v6828_v16 = vadd.f32 %v6611_v18, %v220_v14  ;;  %v3213_v56 = vrot.slane %v3205_v61, %v6639_v2 }
  0xde   :  { %v2833_v25 = vcombine.low %v707_v1, %v711_v5  ;;  %v2840_v29 = vrot.slane %v2830_v4, %v6639_v2  ;;  %v3220_v30 = vrot.slane %v3206_v7, %v6639_v2  ;;  %v971_v63 = vrot.slane %v6778_v22, %v6614_v23 }
  0xdf   :  { %v2847_v53 = vrot.slane %v2831_v8, %v6639_v2  ;;  %v2854_v62 = vrot.slane %v2832_v15, %v6639_v2  ;;  %v975_v36 = vrot.slane %v6778_v22, %v6617_v24  ;;  %v979_v40 = vrot.slane %v6778_v22, %v6620_v28 }
  0xe0   :  { %v2861_v33 = vrot.slane %v2833_v25, %v6639_v2  ;;  %v983_v58 = vrot.slane %v6778_v22, %v6623_v34  ;;  %v3221_v50 = vcombine.low %v3213_v56, %v3220_v30  ;;  %v987_v51 = vrot.slane %v6778_v22, %v6626_v42 }
  0xe1   :  { %v2862_v59 = vcombine.low %v2840_v29, %v2847_v53  ;;  %v991_v54 = vrot.slane %v6778_v22, %v6629_v43  ;;  %v995_v60 = vrot.slane %v6778_v22, %v6632_v47  ;;  %v999_v10 = vrot.slane %v6778_v22, %v6635_v48 }
  0xe2   :  { %v2863_v55 = vcombine.low %v2854_v62, %v2861_v33  ;;  %v3271_v11 = vcombine.low %v971_v63, %v975_v36  ;;  %5712 = vperm.xlu0 %6264, %v3221_v50   ;;  %v3272_v35 = vcombine.low %v979_v40, %v983_v58  ;;  %v715_v44 = vrot.slane %v6704_v46, %v6614_v23 }
  0xe3   :  { %v2870_v19 = vrot.slane %v2862_v59, %v6639_v2  ;;  %v3273_v41 = vcombine.low %v987_v51, %v991_v54  ;;  %v3274_v12 = vcombine.low %v995_v60, %v999_v10  ;;  %v719_v21 = vrot.slane %v6704_v46, %v6617_v24 }
  0xe4   :  { %v2877_v3 = vrot.slane %v2863_v55, %v6639_v2  ;;  %v3281_v13 = vrot.slane %v3271_v11, %v6639_v2  ;;  %v3288_v26 = vrot.slane %v3272_v35, %v6639_v2  ;;  %v723_v31 = vrot.slane %v6704_v46, %v6620_v28 }
  0xe5   :  { %v3295_v22 = vrot.slane %v3273_v41, %v6639_v2  ;;  %v727_v32 = vrot.slane %v6704_v46, %v6623_v34  ;;  %v3302_v39 = vrot.slane %v3274_v12, %v6639_v2  ;;  %v731_v14 = vrot.slane %v6704_v46, %v6626_v42 }
  0xe6   :  { %v2878_v37 = vcombine.low %v2870_v19, %v2877_v3  ;;  %v735_v52 = vrot.slane %v6704_v46, %v6629_v43  ;;  %v3303_v57 = vcombine.low %v3281_v13, %v3288_v26  ;;  %v739_v38 = vrot.slane %v6704_v46, %v6632_v47 }
  0xe7   :  { %v743_v49 = vrot.slane %v6704_v46, %v6635_v48  ;;  %v2879_v61 = vcombine.low %v715_v44, %v719_v21  ;;  %v6875_v1 = vadd.f32 %v6611_v18, %v211_v45  ;;  %v3304_v5 = vcombine.low %v3295_v22, %v3302_v39  ;;  %v232_v22 = vpop.xlane.xlu1 %231  ;;  %v217_v39 = vpop.xlane.xlu0 %216 }
  0xe8   :  { %5691 = vperm.xlu1 %6265, %v2878_v37   ;;  %v2880_v4 = vcombine.low %v723_v31, %v727_v32  ;;  %v2881_v7 = vcombine.low %v731_v14, %v735_v52  ;;  %v6878_v8 = vadd.f32 %v6611_v18, %v226_v27  ;;  %v3311_v15 = vrot.slane %v3303_v57, %v6639_v2 }
  0xe9   :  { %v2882_v56 = vcombine.low %v739_v38, %v743_v49  ;;  %v2889_v25 = vrot.slane %v2879_v61, %v6639_v2  ;;  %v3318_v29 = vrot.slane %v3304_v5, %v6639_v2  ;;  %v1035_v53 = vrot.slane %v6828_v16, %v6614_v23 }
  0xea   :  { %v2896_v46 = vrot.slane %v2880_v4, %v6639_v2  ;;  %v2903_v30 = vrot.slane %v2881_v7, %v6639_v2  ;;  %v1039_v63 = vrot.slane %v6828_v16, %v6617_v24  ;;  %v1043_v33 = vrot.slane %v6828_v16, %v6620_v28 }
  0xeb   :  { %v2910_v62 = vrot.slane %v2882_v56, %v6639_v2  ;;  %v1047_v36 = vrot.slane %v6828_v16, %v6623_v34  ;;  %v3319_v40 = vcombine.low %v3311_v15, %v3318_v29  ;;  %v1051_v50 = vrot.slane %v6828_v16, %v6626_v42 }
  0xec   :  { %v2911_v58 = vcombine.low %v2889_v25, %v2896_v46  ;;  %v1055_v59 = vrot.slane %v6828_v16, %v6629_v43  ;;  %v1059_v54 = vrot.slane %v6828_v16, %v6632_v47  ;;  %v1063_v55 = vrot.slane %v6828_v16, %v6635_v48 }
  0xed   :  { %v2912_v51 = vcombine.low %v2903_v30, %v2910_v62  ;;  %v3369_v60 = vcombine.low %v1035_v53, %v1039_v63  ;;  %5718 = vperm.xlu0 %6264, %v3319_v40   ;;  %v3370_v11 = vcombine.low %v1043_v33, %v1047_v36  ;;  %v747_v35 = vrot.slane %v6733_v20, %v6614_v23 }
  0xee   :  { %v2919_v10 = vrot.slane %v2911_v58, %v6639_v2  ;;  %v3371_v19 = vcombine.low %v1051_v50, %v1055_v59  ;;  %v3372_v44 = vcombine.low %v1059_v54, %v1063_v55  ;;  %v751_v12 = vrot.slane %v6733_v20, %v6617_v24 }
  0xef   :  { %v2926_v41 = vrot.slane %v2912_v51, %v6639_v2  ;;  %v3379_v3 = vrot.slane %v3369_v60, %v6639_v2  ;;  %v3386_v13 = vrot.slane %v3370_v11, %v6639_v2  ;;  %v755_v21 = vrot.slane %v6733_v20, %v6620_v28 }
  0xf0   :  { %v3393_v16 = vrot.slane %v3371_v19, %v6639_v2  ;;  %v759_v26 = vrot.slane %v6733_v20, %v6623_v34  ;;  %v3400_v32 = vrot.slane %v3372_v44, %v6639_v2  ;;  %v763_v27 = vrot.slane %v6733_v20, %v6626_v42 }
  0xf1   :  { %v2927_v31 = vcombine.low %v2919_v10, %v2926_v41  ;;  %v767_v37 = vrot.slane %v6733_v20, %v6629_v43  ;;  %v3401_v14 = vcombine.low %v3379_v3, %v3386_v13  ;;  %v771_v52 = vrot.slane %v6733_v20, %v6632_v47 }
  0xf2   :  { %v775_v45 = vrot.slane %v6733_v20, %v6635_v48  ;;  %v2928_v57 = vcombine.low %v747_v35, %v751_v12  ;;  %v6925_v38 = vadd.f32 %v6611_v18, %v217_v39  ;;  %v3402_v49 = vcombine.low %v3393_v16, %v3400_v32  ;;  %v238_v16 = vpop.xlane.xlu1 %237  ;;  %v223_v32 = vpop.xlane.xlu0 %222 }
  0xf3   :  { %5694 = vperm.xlu1 %6265, %v2927_v31   ;;  %v2929_v61 = vcombine.low %v755_v21, %v759_v26  ;;  %v2930_v5 = vcombine.low %v763_v27, %v767_v37  ;;  %v6928_v4 = vadd.f32 %v6611_v18, %v232_v22  ;;  %v3409_v7 = vrot.slane %v3401_v14, %v6639_v2 }
  0xf4   :  { %v2931_v15 = vcombine.low %v771_v52, %v775_v45  ;;  %v2938_v56 = vrot.slane %v2928_v57, %v6639_v2  ;;  %v3416_v25 = vrot.slane %v3402_v49, %v6639_v2  ;;  %v1099_v46 = vrot.slane %v6878_v8, %v6614_v23 }
  0xf5   :  { %v2945_v20 = vrot.slane %v2929_v61, %v6639_v2  ;;  %v2952_v29 = vrot.slane %v2930_v5, %v6639_v2  ;;  %v1103_v53 = vrot.slane %v6878_v8, %v6617_v24  ;;  %v1107_v62 = vrot.slane %v6878_v8, %v6620_v28 }
  0xf6   :  { %v2959_v30 = vrot.slane %v2931_v15, %v6639_v2  ;;  %v1111_v63 = vrot.slane %v6878_v8, %v6623_v34  ;;  %v3417_v33 = vcombine.low %v3409_v7, %v3416_v25  ;;  %v1115_v40 = vrot.slane %v6878_v8, %v6626_v42 }
  0xf7   :  { %v2960_v36 = vcombine.low %v2938_v56, %v2945_v20  ;;  %v1119_v58 = vrot.slane %v6878_v8, %v6629_v43  ;;  %v1123_v59 = vrot.slane %v6878_v8, %v6632_v47  ;;  %v1127_v51 = vrot.slane %v6878_v8, %v6635_v48 }
  0xf8   :  { %v2961_v50 = vcombine.low %v2952_v29, %v2959_v30  ;;  %v3467_v54 = vcombine.low %v1099_v46, %v1103_v53  ;;  %5724 = vperm.xlu0 %6264, %v3417_v33   ;;  %v3468_v60 = vcombine.low %v1107_v62, %v1111_v63  ;;  %v811_v11 = vrot.slane %v6775_v9, %v6614_v23 }
  0xf9   :  { %v2968_v55 = vrot.slane %v2960_v36, %v6639_v2  ;;  %v3469_v10 = vcombine.low %v1115_v40, %v1119_v58  ;;  %v3470_v35 = vcombine.low %v1123_v59, %v1127_v51  ;;  %v815_v44 = vrot.slane %v6775_v9, %v6617_v24 }
  0xfa   :  { %v2975_v19 = vrot.slane %v2961_v50, %v6639_v2  ;;  %v3477_v41 = vrot.slane %v3467_v54, %v6639_v2  ;;  %v3484_v3 = vrot.slane %v3468_v60, %v6639_v2  ;;  %v819_v12 = vrot.slane %v6775_v9, %v6620_v28 }
  0xfb   :  { %v3491_v8 = vrot.slane %v3469_v10, %v6639_v2  ;;  %v823_v13 = vrot.slane %v6775_v9, %v6623_v34  ;;  %v3498_v26 = vrot.slane %v3470_v35, %v6639_v2  ;;  %v827_v22 = vrot.slane %v6775_v9, %v6626_v42 }
  0xfc   :  { %v2976_v21 = vcombine.low %v2968_v55, %v2975_v19  ;;  %v831_v31 = vrot.slane %v6775_v9, %v6629_v43  ;;  %v3499_v27 = vcombine.low %v3477_v41, %v3484_v3  ;;  %v835_v37 = vrot.slane %v6775_v9, %v6632_v47 }
  0xfd   :  { %v839_v39 = vrot.slane %v6775_v9, %v6635_v48  ;;  %v3026_v14 = vcombine.low %v811_v11, %v815_v44  ;;  %v6975_v52 = vadd.f32 %v6611_v18, %v223_v32  ;;  %v3500_v45 = vcombine.low %v3491_v8, %v3498_v26  ;;  %v244_v8 = vpop.xlane.xlu1 %243  ;;  %v229_v26 = vpop.xlane.xlu0 %228 }
  0xfe   :  { %5697 = vperm.xlu1 %6265, %v2976_v21   ;;  %v3027_v57 = vcombine.low %v819_v12, %v823_v13  ;;  %v3028_v49 = vcombine.low %v827_v22, %v831_v31  ;;  %v6978_v61 = vadd.f32 %v6611_v18, %v238_v16  ;;  %v3507_v5 = vrot.slane %v3499_v27, %v6639_v2 }
  0xff   :  { %v3029_v7 = vcombine.low %v835_v37, %v839_v39  ;;  %v3036_v15 = vrot.slane %v3026_v14, %v6639_v2  ;;  %v3514_v56 = vrot.slane %v3500_v45, %v6639_v2  ;;  %v1163_v20 = vrot.slane %v6928_v4, %v6614_v23 }
 0x100   :  { %v3043_v9 = vrot.slane %v3027_v57, %v6639_v2  ;;  %v3050_v25 = vrot.slane %v3028_v49, %v6639_v2  ;;  %v1167_v46 = vrot.slane %v6928_v4, %v6617_v24  ;;  %v1171_v30 = vrot.slane %v6928_v4, %v6620_v28 }
 0x101   :  { %v3057_v29 = vrot.slane %v3029_v7, %v6639_v2  ;;  %v1175_v53 = vrot.slane %v6928_v4, %v6623_v34  ;;  %v3515_v62 = vcombine.low %v3507_v5, %v3514_v56  ;;  %v1179_v33 = vrot.slane %v6928_v4, %v6626_v42 }
 0x102   :  { %v3058_v63 = vcombine.low %v3036_v15, %v3043_v9  ;;  %v1183_v36 = vrot.slane %v6928_v4, %v6629_v43  ;;  %v1187_v58 = vrot.slane %v6928_v4, %v6632_v47  ;;  %v1191_v50 = vrot.slane %v6928_v4, %v6635_v48 }
 0x103   :  { %v3059_v40 = vcombine.low %v3050_v25, %v3057_v29  ;;  %v3565_v59 = vcombine.low %v1163_v20, %v1167_v46  ;;  %5730 = vperm.xlu0 %6264, %v3515_v62   ;;  %v3566_v54 = vcombine.low %v1171_v30, %v1175_v53  ;;  %v875_v60 = vrot.slane %v6825_v6, %v6614_v23 }
 0x104   :  { %v3066_v51 = vrot.slane %v3058_v63, %v6639_v2  ;;  %v3567_v55 = vcombine.low %v1179_v33, %v1183_v36  ;;  %v3568_v11 = vcombine.low %v1187_v58, %v1191_v50  ;;  %v879_v35 = vrot.slane %v6825_v6, %v6617_v24 }
 0x105   :  { %v3073_v10 = vrot.slane %v3059_v40, %v6639_v2  ;;  %v3575_v19 = vrot.slane %v3565_v59, %v6639_v2  ;;  %v3582_v41 = vrot.slane %v3566_v54, %v6639_v2  ;;  %v883_v44 = vrot.slane %v6825_v6, %v6620_v28 }
 0x106   :  { %v3589_v4 = vrot.slane %v3567_v55, %v6639_v2  ;;  %v887_v3 = vrot.slane %v6825_v6, %v6623_v34  ;;  %v3596_v13 = vrot.slane %v3568_v11, %v6639_v2  ;;  %v891_v16 = vrot.slane %v6825_v6, %v6626_v42 }
 0x107   :  { %v3074_v12 = vcombine.low %v3066_v51, %v3073_v10  ;;  %v895_v21 = vrot.slane %v6825_v6, %v6629_v43  ;;  %v3597_v22 = vcombine.low %v3575_v19, %v3582_v41  ;;  %v899_v31 = vrot.slane %v6825_v6, %v6632_v47 }
 0x108   :  { %v903_v32 = vrot.slane %v6825_v6, %v6635_v48  ;;  %v3124_v27 = vcombine.low %v875_v60, %v879_v35  ;;  %v7025_v37 = vadd.f32 %v6611_v18, %v229_v26  ;;  %v3598_v39 = vcombine.low %v3589_v4, %v3596_v13  ;;  %v250_v4 = vpop.xlane.xlu1 %249  ;;  %v235_v13 = vpop.xlane.xlu0 %234 }
 0x109   :  { %5703 = vperm.xlu1 %6265, %v3074_v12   ;;  %v3125_v14 = vcombine.low %v883_v44, %v887_v3  ;;  %v3126_v45 = vcombine.low %v891_v16, %v895_v21  ;;  %v7028_v57 = vadd.f32 %v6611_v18, %v244_v8  ;;  %v3605_v49 = vrot.slane %v3597_v22, %v6639_v2 }
 0x10a   :  { %v3127_v5 = vcombine.low %v899_v31, %v903_v32  ;;  %v3134_v7 = vrot.slane %v3124_v27, %v6639_v2  ;;  %v3612_v15 = vrot.slane %v3598_v39, %v6639_v2  ;;  %v1227_v9 = vrot.slane %v6978_v61, %v6614_v23 }
 0x10b   :  { %v3141_v6 = vrot.slane %v3125_v14, %v6639_v2  ;;  %v3148_v56 = vrot.slane %v3126_v45, %v6639_v2  ;;  %v1231_v20 = vrot.slane %v6978_v61, %v6617_v24  ;;  %v1235_v29 = vrot.slane %v6978_v61, %v6620_v28 }
 0x10c   :  { %v3155_v25 = vrot.slane %v3127_v5, %v6639_v2  ;;  %v1239_v46 = vrot.slane %v6978_v61, %v6623_v34  ;;  %v3613_v30 = vcombine.low %v3605_v49, %v3612_v15  ;;  %v1243_v62 = vrot.slane %v6978_v61, %v6626_v42 }
 0x10d   :  { %v3156_v53 = vcombine.low %v3134_v7, %v3141_v6  ;;  %v1247_v63 = vrot.slane %v6978_v61, %v6629_v43  ;;  %v1251_v36 = vrot.slane %v6978_v61, %v6632_v47  ;;  %v1255_v40 = vrot.slane %v6978_v61, %v6635_v48 }
 0x10e   :  { %v3157_v33 = vcombine.low %v3148_v56, %v3155_v25  ;;  %v3663_v58 = vcombine.low %v1227_v9, %v1231_v20  ;;  %5736 = vperm.xlu0 %6264, %v3613_v30   ;;  %v3664_v59 = vcombine.low %v1235_v29, %v1239_v46  ;;  %v939_v54 = vrot.slane %v6875_v1, %v6614_v23 }
 0x10f   :  { %v3164_v50 = vrot.slane %v3156_v53, %v6639_v2  ;;  %v3665_v51 = vcombine.low %v1243_v62, %v1247_v63  ;;  %v3666_v60 = vcombine.low %v1251_v36, %v1255_v40  ;;  %v943_v11 = vrot.slane %v6875_v1, %v6617_v24 }
 0x110   :  { %v3171_v55 = vrot.slane %v3157_v33, %v6639_v2  ;;  %v3673_v10 = vrot.slane %v3663_v58, %v6639_v2  ;;  %v3680_v19 = vrot.slane %v3664_v59, %v6639_v2  ;;  %v947_v35 = vrot.slane %v6875_v1, %v6620_v28 }
 0x111   :  { %v3687_v61 = vrot.slane %v3665_v51, %v6639_v2  ;;  %v951_v41 = vrot.slane %v6875_v1, %v6623_v34  ;;  %v3694_v3 = vrot.slane %v3666_v60, %v6639_v2  ;;  %v955_v8 = vrot.slane %v6875_v1, %v6626_v42 }
 0x112   :  { %v3172_v44 = vcombine.low %v3164_v50, %v3171_v55  ;;  %v959_v12 = vrot.slane %v6875_v1, %v6629_v43  ;;  %v3695_v16 = vcombine.low %v3673_v10, %v3680_v19  ;;  %v963_v21 = vrot.slane %v6875_v1, %v6632_v47 }
 0x113   :  { %v967_v26 = vrot.slane %v6875_v1, %v6635_v48  ;;  %v3222_v22 = vcombine.low %v939_v54, %v943_v11  ;;  %v7075_v31 = vadd.f32 %v6611_v18, %v235_v13  ;;  %v3696_v32 = vcombine.low %v3687_v61, %v3694_v3  ;;  %v256_v61 = vpop.xlane.xlu1 %255  ;;  %v241_v3 = vpop.xlane.xlu0 %240 }
 0x114   :  { %5709 = vperm.xlu1 %6265, %v3172_v44   ;;  %v3223_v27 = vcombine.low %v947_v35, %v951_v41  ;;  %v3224_v39 = vcombine.low %v955_v8, %v959_v12  ;;  %v7078_v14 = vadd.f32 %v6611_v18, %v250_v4  ;;  %v3703_v45 = vrot.slane %v3695_v16, %v6639_v2 }
 0x115   :  { %v3225_v49 = vcombine.low %v963_v21, %v967_v26  ;;  %v3232_v5 = vrot.slane %v3222_v22, %v6639_v2  ;;  %v3710_v7 = vrot.slane %v3696_v32, %v6639_v2  ;;  %v1291_v6 = vrot.slane %v7028_v57, %v6614_v23 }
 0x116   :  { %v3239_v1 = vrot.slane %v3223_v27, %v6639_v2  ;;  %v3246_v15 = vrot.slane %v3224_v39, %v6639_v2  ;;  %v1295_v9 = vrot.slane %v7028_v57, %v6617_v24  ;;  %v1299_v25 = vrot.slane %v7028_v57, %v6620_v28 }
 0x117   :  { %v3253_v56 = vrot.slane %v3225_v49, %v6639_v2  ;;  %v1303_v20 = vrot.slane %v7028_v57, %v6623_v34  ;;  %v3711_v29 = vcombine.low %v3703_v45, %v3710_v7  ;;  %v1307_v30 = vrot.slane %v7028_v57, %v6626_v42 }
 0x118   :  { %v3254_v46 = vcombine.low %v3232_v5, %v3239_v1  ;;  %v1311_v53 = vrot.slane %v7028_v57, %v6629_v43  ;;  %v1315_v63 = vrot.slane %v7028_v57, %v6632_v47  ;;  %v1319_v33 = vrot.slane %v7028_v57, %v6635_v48 }
 0x119   :  { %v3255_v62 = vcombine.low %v3246_v15, %v3253_v56  ;;  %v3761_v36 = vcombine.low %v1291_v6, %v1295_v9  ;;  %5742 = vperm.xlu0 %6264, %v3711_v29   ;;  %v3762_v58 = vcombine.low %v1299_v25, %v1303_v20  ;;  %v1003_v59 = vrot.slane %v6925_v38, %v6614_v23 }
 0x11a   :  { %v3262_v40 = vrot.slane %v3254_v46, %v6639_v2  ;;  %v3763_v50 = vcombine.low %v1307_v30, %v1311_v53  ;;  %v3764_v54 = vcombine.low %v1315_v63, %v1319_v33  ;;  %v1007_v60 = vrot.slane %v6925_v38, %v6617_v24 }
 0x11b   :  { %v3269_v51 = vrot.slane %v3255_v62, %v6639_v2  ;;  %v3771_v55 = vrot.slane %v3761_v36, %v6639_v2  ;;  %v3778_v10 = vrot.slane %v3762_v58, %v6639_v2  ;;  %v1011_v11 = vrot.slane %v6925_v38, %v6620_v28 }
 0x11c   :  { %v3785_v57 = vrot.slane %v3763_v50, %v6639_v2  ;;  %v1015_v19 = vrot.slane %v6925_v38, %v6623_v34  ;;  %v3792_v41 = vrot.slane %v3764_v54, %v6639_v2  ;;  %v1019_v4 = vrot.slane %v6925_v38, %v6626_v42 }
 0x11d   :  { %v3270_v35 = vcombine.low %v3262_v40, %v3269_v51  ;;  %v1023_v44 = vrot.slane %v6925_v38, %v6629_v43  ;;  %v3793_v8 = vcombine.low %v3771_v55, %v3778_v10  ;;  %v1027_v12 = vrot.slane %v6925_v38, %v6632_v47 }
 0x11e   :  { %v1031_v13 = vrot.slane %v6925_v38, %v6635_v48  ;;  %v3320_v16 = vcombine.low %v1003_v59, %v1007_v60  ;;  %v7125_v21 = vadd.f32 %v6611_v18, %v241_v3  ;;  %v3794_v26 = vcombine.low %v3785_v57, %v3792_v41  ;;  %v262_v57 = vpop.xlane.xlu1 %261  ;;  %v247_v41 = vpop.xlane.xlu0 %246 }
 0x11f   :  { %5715 = vperm.xlu1 %6265, %v3270_v35   ;;  %v3321_v22 = vcombine.low %v1011_v11, %v1015_v19  ;;  %v3322_v32 = vcombine.low %v1019_v4, %v1023_v44  ;;  %v7128_v27 = vadd.f32 %v6611_v18, %v256_v61  ;;  %v3801_v39 = vrot.slane %v3793_v8, %v6639_v2 }
 0x120   :  { %v3323_v45 = vcombine.low %v1027_v12, %v1031_v13  ;;  %v3330_v49 = vrot.slane %v3320_v16, %v6639_v2  ;;  %v3808_v5 = vrot.slane %v3794_v26, %v6639_v2  ;;  %v1355_v1 = vrot.slane %v7078_v14, %v6614_v23 }
 0x121   :  { %v3337_v38 = vrot.slane %v3321_v22, %v6639_v2  ;;  %v3344_v7 = vrot.slane %v3322_v32, %v6639_v2  ;;  %v1359_v6 = vrot.slane %v7078_v14, %v6617_v24  ;;  %v1363_v56 = vrot.slane %v7078_v14, %v6620_v28 }
 0x122   :  { %v3351_v15 = vrot.slane %v3323_v45, %v6639_v2  ;;  %v1367_v9 = vrot.slane %v7078_v14, %v6623_v34  ;;  %v3809_v25 = vcombine.low %v3801_v39, %v3808_v5  ;;  %v1371_v29 = vrot.slane %v7078_v14, %v6626_v42 }
 0x123   :  { %v3352_v20 = vcombine.low %v3330_v49, %v3337_v38  ;;  %v1375_v46 = vrot.slane %v7078_v14, %v6629_v43  ;;  %v1379_v53 = vrot.slane %v7078_v14, %v6632_v47  ;;  %v1383_v62 = vrot.slane %v7078_v14, %v6635_v48 }
 0x124   :  { %v3353_v30 = vcombine.low %v3344_v7, %v3351_v15  ;;  %v3859_v63 = vcombine.low %v1355_v1, %v1359_v6  ;;  %5748 = vperm.xlu0 %6264, %v3809_v25   ;;  %v3860_v36 = vcombine.low %v1363_v56, %v1367_v9  ;;  %v1067_v58 = vrot.slane %v6975_v52, %v6614_v23 }
 0x125   :  { %v3360_v33 = vrot.slane %v3352_v20, %v6639_v2  ;;  %v3861_v40 = vcombine.low %v1371_v29, %v1375_v46  ;;  %v3862_v59 = vcombine.low %v1379_v53, %v1383_v62  ;;  %v1071_v54 = vrot.slane %v6975_v52, %v6617_v24 }
 0x126   :  { %v3367_v50 = vrot.slane %v3353_v30, %v6639_v2  ;;  %v3869_v51 = vrot.slane %v3859_v63, %v6639_v2  ;;  %v3876_v55 = vrot.slane %v3860_v36, %v6639_v2  ;;  %v1075_v60 = vrot.slane %v6975_v52, %v6620_v28 }
 0x127   :  { %v3883_v14 = vrot.slane %v3861_v40, %v6639_v2  ;;  %v1079_v10 = vrot.slane %v6975_v52, %v6623_v34  ;;  %v3890_v19 = vrot.slane %v3862_v59, %v6639_v2  ;;  %v1083_v61 = vrot.slane %v6975_v52, %v6626_v42 }
 0x128   :  { %v3368_v11 = vcombine.low %v3360_v33, %v3367_v50  ;;  %v1087_v35 = vrot.slane %v6975_v52, %v6629_v43  ;;  %v3891_v4 = vcombine.low %v3869_v51, %v3876_v55  ;;  %v1091_v44 = vrot.slane %v6975_v52, %v6632_v47 }
 0x129   :  { %v1095_v3 = vrot.slane %v6975_v52, %v6635_v48  ;;  %v3418_v8 = vcombine.low %v1067_v58, %v1071_v54  ;;  %v7175_v12 = vadd.f32 %v6611_v18, %v247_v41  ;;  %v3892_v13 = vcombine.low %v3883_v14, %v3890_v19  ;;  %v268_v14 = vpop.xlane.xlu1 %267  ;;  %v253_v19 = vpop.xlane.xlu0 %252 }
 0x12a   :  { %5721 = vperm.xlu1 %6265, %v3368_v11   ;;  %v3419_v16 = vcombine.low %v1075_v60, %v1079_v10  ;;  %v3420_v26 = vcombine.low %v1083_v61, %v1087_v35  ;;  %v7178_v22 = vadd.f32 %v6611_v18, %v262_v57  ;;  %v3899_v32 = vrot.slane %v3891_v4, %v6639_v2 }
 0x12b   :  { %v3421_v39 = vcombine.low %v1091_v44, %v1095_v3  ;;  %v3428_v45 = vrot.slane %v3418_v8, %v6639_v2  ;;  %v3906_v49 = vrot.slane %v3892_v13, %v6639_v2  ;;  %v1419_v38 = vrot.slane %v7128_v27, %v6614_v23 }
 0x12c   :  { %v3435_v52 = vrot.slane %v3419_v16, %v6639_v2  ;;  %v3442_v5 = vrot.slane %v3420_v26, %v6639_v2  ;;  %v1423_v1 = vrot.slane %v7128_v27, %v6617_v24  ;;  %v1427_v15 = vrot.slane %v7128_v27, %v6620_v28 }
 0x12d   :  { %v3449_v7 = vrot.slane %v3421_v39, %v6639_v2  ;;  %v1431_v6 = vrot.slane %v7128_v27, %v6623_v34  ;;  %v3907_v56 = vcombine.low %v3899_v32, %v3906_v49  ;;  %v1435_v25 = vrot.slane %v7128_v27, %v6626_v42 }
 0x12e   :  { %v3450_v9 = vcombine.low %v3428_v45, %v3435_v52  ;;  %v1439_v20 = vrot.slane %v7128_v27, %v6629_v43  ;;  %v1443_v46 = vrot.slane %v7128_v27, %v6632_v47  ;;  %v1447_v30 = vrot.slane %v7128_v27, %v6635_v48 }
 0x12f   :  { %v3451_v29 = vcombine.low %v3442_v5, %v3449_v7  ;;  %v3957_v53 = vcombine.low %v1419_v38, %v1423_v1  ;;  %5754 = vperm.xlu0 %6264, %v3907_v56   ;;  %v3958_v63 = vcombine.low %v1427_v15, %v1431_v6  ;;  %v1131_v36 = vrot.slane %v7025_v37, %v6614_v23 }
 0x130   :  { %v3458_v62 = vrot.slane %v3450_v9, %v6639_v2  ;;  %v3959_v33 = vcombine.low %v1435_v25, %v1439_v20  ;;  %v3960_v58 = vcombine.low %v1443_v46, %v1447_v30  ;;  %v1135_v59 = vrot.slane %v7025_v37, %v6617_v24 }
 0x131   :  { %v3465_v40 = vrot.slane %v3451_v29, %v6639_v2  ;;  %v3967_v50 = vrot.slane %v3957_v53, %v6639_v2  ;;  %v3974_v51 = vrot.slane %v3958_v63, %v6639_v2  ;;  %v1139_v54 = vrot.slane %v7025_v37, %v6620_v28 }
 0x132   :  { %v3981_v27 = vrot.slane %v3959_v33, %v6639_v2  ;;  %v1143_v55 = vrot.slane %v7025_v37, %v6623_v34  ;;  %v3988_v10 = vrot.slane %v3960_v58, %v6639_v2  ;;  %v1147_v57 = vrot.slane %v7025_v37, %v6626_v42 }
 0x133   :  { %v3466_v60 = vcombine.low %v3458_v62, %v3465_v40  ;;  %v1151_v11 = vrot.slane %v7025_v37, %v6629_v43  ;;  %v3989_v61 = vcombine.low %v3967_v50, %v3974_v51  ;;  %v1155_v35 = vrot.slane %v7025_v37, %v6632_v47 }
 0x134   :  { %v1159_v41 = vrot.slane %v7025_v37, %v6635_v48  ;;  %v3516_v4 = vcombine.low %v1131_v36, %v1135_v59  ;;  %v7225_v44 = vadd.f32 %v6611_v18, %v253_v19  ;;  %v3990_v3 = vcombine.low %v3981_v27, %v3988_v10  ;;  %v274_v27 = vpop.xlane.xlu1 %273  ;;  %v259_v10 = vpop.xlane.xlu0 %258 }
 0x135   :  { %5727 = vperm.xlu1 %6265, %v3466_v60   ;;  %v3517_v8 = vcombine.low %v1139_v54, %v1143_v55  ;;  %v3518_v13 = vcombine.low %v1147_v57, %v1151_v11  ;;  %v7228_v16 = vadd.f32 %v6611_v18, %v268_v14  ;;  %v3997_v26 = vrot.slane %v3989_v61, %v6639_v2 }
 0x136   :  { %v3519_v32 = vcombine.low %v1155_v35, %v1159_v41  ;;  %v3526_v39 = vrot.slane %v3516_v4, %v6639_v2  ;;  %v4004_v45 = vrot.slane %v3990_v3, %v6639_v2  ;;  %v1483_v52 = vrot.slane %v7178_v22, %v6614_v23 }
 0x137   :  { %v3533_v37 = vrot.slane %v3517_v8, %v6639_v2  ;;  %v3540_v49 = vrot.slane %v3518_v13, %v6639_v2  ;;  %v1487_v38 = vrot.slane %v7178_v22, %v6617_v24  ;;  %v1491_v7 = vrot.slane %v7178_v22, %v6620_v28 }
 0x138   :  { %v3547_v5 = vrot.slane %v3519_v32, %v6639_v2  ;;  %v1495_v1 = vrot.slane %v7178_v22, %v6623_v34  ;;  %v4005_v15 = vcombine.low %v3997_v26, %v4004_v45  ;;  %v1499_v56 = vrot.slane %v7178_v22, %v6626_v42 }
 0x139   :  { %v3548_v6 = vcombine.low %v3526_v39, %v3533_v37  ;;  %v1503_v9 = vrot.slane %v7178_v22, %v6629_v43  ;;  %v1507_v20 = vrot.slane %v7178_v22, %v6632_v47  ;;  %v1511_v29 = vrot.slane %v7178_v22, %v6635_v48 }
 0x13a   :  { %v3549_v25 = vcombine.low %v3540_v49, %v3547_v5  ;;  %v4055_v46 = vcombine.low %v1483_v52, %v1487_v38  ;;  %5760 = vperm.xlu0 %6264, %v4005_v15   ;;  %v4056_v53 = vcombine.low %v1491_v7, %v1495_v1  ;;  %v1195_v63 = vrot.slane %v7075_v31, %v6614_v23 }
 0x13b   :  { %v3556_v30 = vrot.slane %v3548_v6, %v6639_v2  ;;  %v4057_v62 = vcombine.low %v1499_v56, %v1503_v9  ;;  %v4058_v36 = vcombine.low %v1507_v20, %v1511_v29  ;;  %v1199_v58 = vrot.slane %v7075_v31, %v6617_v24 }
 0x13c   :  { %v3563_v33 = vrot.slane %v3549_v25, %v6639_v2  ;;  %v4065_v40 = vrot.slane %v4055_v46, %v6639_v2  ;;  %v4072_v50 = vrot.slane %v4056_v53, %v6639_v2  ;;  %v1203_v59 = vrot.slane %v7075_v31, %v6620_v28 }
 0x13d   :  { %v4079_v22 = vrot.slane %v4057_v62, %v6639_v2  ;;  %v1207_v51 = vrot.slane %v7075_v31, %v6623_v34  ;;  %v4086_v55 = vrot.slane %v4058_v36, %v6639_v2  ;;  %v1211_v14 = vrot.slane %v7075_v31, %v6626_v42 }
 0x13e   :  { %v3564_v54 = vcombine.low %v3556_v30, %v3563_v33  ;;  %v1215_v60 = vrot.slane %v7075_v31, %v6629_v43  ;;  %v4087_v57 = vcombine.low %v4065_v40, %v4072_v50  ;;  %v1219_v11 = vrot.slane %v7075_v31, %v6632_v47 }
 0x13f   :  { %v1223_v19 = vrot.slane %v7075_v31, %v6635_v48  ;;  %v3614_v61 = vcombine.low %v1195_v63, %v1199_v58  ;;  %v7275_v35 = vadd.f32 %v6611_v18, %v259_v10  ;;  %v4088_v41 = vcombine.low %v4079_v22, %v4086_v55  ;;  %v280_v22 = vpop.xlane.xlu1 %279  ;;  %v265_v55 = vpop.xlane.xlu0 %264 }
 0x140   :  { %5733 = vperm.xlu1 %6265, %v3564_v54   ;;  %v3615_v4 = vcombine.low %v1203_v59, %v1207_v51  ;;  %v3616_v3 = vcombine.low %v1211_v14, %v1215_v60  ;;  %v7278_v8 = vadd.f32 %v6611_v18, %v274_v27  ;;  %v4095_v13 = vrot.slane %v4087_v57, %v6639_v2 }
 0x141   :  { %v3617_v26 = vcombine.low %v1219_v11, %v1223_v19  ;;  %v3624_v32 = vrot.slane %v3614_v61, %v6639_v2  ;;  %v4102_v39 = vrot.slane %v4088_v41, %v6639_v2  ;;  %v1547_v37 = vrot.slane %v7228_v16, %v6614_v23 }
 0x142   :  { %v3631_v31 = vrot.slane %v3615_v4, %v6639_v2  ;;  %v3638_v45 = vrot.slane %v3616_v3, %v6639_v2  ;;  %v1551_v52 = vrot.slane %v7228_v16, %v6617_v24  ;;  %v1555_v5 = vrot.slane %v7228_v16, %v6620_v28 }
 0x143   :  { %v3645_v49 = vrot.slane %v3617_v26, %v6639_v2  ;;  %v1559_v38 = vrot.slane %v7228_v16, %v6623_v34  ;;  %v4103_v7 = vcombine.low %v4095_v13, %v4102_v39  ;;  %v1563_v15 = vrot.slane %v7228_v16, %v6626_v42 }
 0x144   :  { %v3646_v1 = vcombine.low %v3624_v32, %v3631_v31  ;;  %v1567_v6 = vrot.slane %v7228_v16, %v6629_v43  ;;  %v1571_v9 = vrot.slane %v7228_v16, %v6632_v47  ;;  %v1575_v25 = vrot.slane %v7228_v16, %v6635_v48 }
 0x145   :  { %v3647_v56 = vcombine.low %v3638_v45, %v3645_v49  ;;  %v4153_v20 = vcombine.low %v1547_v37, %v1551_v52  ;;  %5766 = vperm.xlu0 %6264, %v4103_v7   ;;  %v4154_v46 = vcombine.low %v1555_v5, %v1559_v38  ;;  %v1259_v53 = vrot.slane %v7125_v21, %v6614_v23 }
 0x146   :  { %v3654_v29 = vrot.slane %v3646_v1, %v6639_v2  ;;  %v4155_v30 = vcombine.low %v1563_v15, %v1567_v6  ;;  %v4156_v63 = vcombine.low %v1571_v9, %v1575_v25  ;;  %v1263_v36 = vrot.slane %v7125_v21, %v6617_v24 }
 0x147   :  { %v3661_v62 = vrot.slane %v3647_v56, %v6639_v2  ;;  %v4163_v33 = vrot.slane %v4153_v20, %v6639_v2  ;;  %v4170_v40 = vrot.slane %v4154_v46, %v6639_v2  ;;  %v1267_v58 = vrot.slane %v7125_v21, %v6620_v28 }
 0x148   :  { %v4177_v16 = vrot.slane %v4155_v30, %v6639_v2  ;;  %v1271_v50 = vrot.slane %v7125_v21, %v6623_v34  ;;  %v4184_v51 = vrot.slane %v4156_v63, %v6639_v2  ;;  %v1275_v27 = vrot.slane %v7125_v21, %v6626_v42 }
 0x149   :  { %v3662_v59 = vcombine.low %v3654_v29, %v3661_v62  ;;  %v1279_v54 = vrot.slane %v7125_v21, %v6629_v43  ;;  %v4185_v14 = vcombine.low %v4163_v33, %v4170_v40  ;;  %v1283_v60 = vrot.slane %v7125_v21, %v6632_v47 }
 0x14a   :  { %v1287_v10 = vrot.slane %v7125_v21, %v6635_v48  ;;  %v3712_v57 = vcombine.low %v1259_v53, %v1263_v36  ;;  %v7325_v11 = vadd.f32 %v6611_v18, %v265_v55  ;;  %v4186_v19 = vcombine.low %v4177_v16, %v4184_v51  ;;  %v286_v16 = vpop.xlane.xlu1 %285  ;;  %v271_v51 = vpop.xlane.xlu0 %270 }
 0x14b   :  { %5739 = vperm.xlu1 %6265, %v3662_v59   ;;  %v3713_v61 = vcombine.low %v1267_v58, %v1271_v50  ;;  %v3714_v41 = vcombine.low %v1275_v27, %v1279_v54  ;;  %v7328_v4 = vadd.f32 %v6611_v18, %v280_v22  ;;  %v4193_v3 = vrot.slane %v4185_v14, %v6639_v2 }
 0x14c   :  { %v3715_v13 = vcombine.low %v1283_v60, %v1287_v10  ;;  %v3722_v26 = vrot.slane %v3712_v57, %v6639_v2  ;;  %v4200_v32 = vrot.slane %v4186_v19, %v6639_v2  ;;  %v1611_v31 = vrot.slane %v7278_v8, %v6614_v23 }
 0x14d   :  { %v3729_v21 = vrot.slane %v3713_v61, %v6639_v2  ;;  %v3736_v39 = vrot.slane %v3714_v41, %v6639_v2  ;;  %v1615_v37 = vrot.slane %v7278_v8, %v6617_v24  ;;  %v1619_v49 = vrot.slane %v7278_v8, %v6620_v28 }
 0x14e   :  { %v3743_v45 = vrot.slane %v3715_v13, %v6639_v2  ;;  %v1623_v52 = vrot.slane %v7278_v8, %v6623_v34  ;;  %v4201_v5 = vcombine.low %v4193_v3, %v4200_v32  ;;  %v1627_v7 = vrot.slane %v7278_v8, %v6626_v42 }
 0x14f   :  { %v3744_v38 = vcombine.low %v3722_v26, %v3729_v21  ;;  %v1631_v1 = vrot.slane %v7278_v8, %v6629_v43  ;;  %v1635_v6 = vrot.slane %v7278_v8, %v6632_v47  ;;  %v1639_v56 = vrot.slane %v7278_v8, %v6635_v48 }
 0x150   :  { %v3745_v15 = vcombine.low %v3736_v39, %v3743_v45  ;;  %v4251_v9 = vcombine.low %v1611_v31, %v1615_v37  ;;  %5772 = vperm.xlu0 %6264, %v4201_v5   ;;  %v4252_v20 = vcombine.low %v1619_v49, %v1623_v52  ;;  %v1323_v46 = vrot.slane %v7175_v12, %v6614_v23 }
 0x151   :  { %v3752_v25 = vrot.slane %v3744_v38, %v6639_v2  ;;  %v4253_v29 = vcombine.low %v1627_v7, %v1631_v1  ;;  %v4254_v53 = vcombine.low %v1635_v6, %v1639_v56  ;;  %v1327_v63 = vrot.slane %v7175_v12, %v6617_v24 }
 0x152   :  { %v3759_v30 = vrot.slane %v3745_v15, %v6639_v2  ;;  %v4261_v62 = vrot.slane %v4251_v9, %v6639_v2  ;;  %v4268_v33 = vrot.slane %v4252_v20, %v6639_v2  ;;  %v1331_v36 = vrot.slane %v7175_v12, %v6620_v28 }
 0x153   :  { %v4275_v8 = vrot.slane %v4253_v29, %v6639_v2  ;;  %v1335_v40 = vrot.slane %v7175_v12, %v6623_v34  ;;  %v4282_v50 = vrot.slane %v4254_v53, %v6639_v2  ;;  %v1339_v22 = vrot.slane %v7175_v12, %v6626_v42 }
 0x154   :  { %v3760_v58 = vcombine.low %v3752_v25, %v3759_v30  ;;  %v1343_v59 = vrot.slane %v7175_v12, %v6629_v43  ;;  %v4283_v27 = vcombine.low %v4261_v62, %v4268_v33  ;;  %v1347_v54 = vrot.slane %v7175_v12, %v6632_v47  ;;  %v277_v62 = vpop.xlane.xlu0 %276 }
 0x155   :  { %v1351_v55 = vrot.slane %v7175_v12, %v6635_v48  ;;  %v3810_v14 = vcombine.low %v1323_v46, %v1327_v63  ;;  %v7375_v60 = vadd.f32 %v6611_v18, %v271_v51  ;;  %v4284_v10 = vcombine.low %v4275_v8, %v4282_v50 }
 0x156   :  { %5745 = vperm.xlu1 %6265, %v3760_v58   ;;  %v3811_v57 = vcombine.low %v1331_v36, %v1335_v40  ;;  %v3812_v19 = vcombine.low %v1339_v22, %v1343_v59  ;;  %v7378_v61 = vadd.f32 %v6611_v18, %v286_v16  ;;  %v4291_v41 = vrot.slane %v4283_v27, %v6639_v2  ;;  %v292_v36 = vpop.xlane.xlu1 %291 }
 0x157   :  { %v3813_v3 = vcombine.low %v1347_v54, %v1351_v55  ;;  %v3820_v13 = vrot.slane %v3810_v14, %v6639_v2  ;;  %v4298_v26 = vrot.slane %v4284_v10, %v6639_v2  ;;  %v1675_v21 = vrot.slane %v7328_v4, %v6614_v23 }
 0x158   :  { %v3827_v12 = vrot.slane %v3811_v57, %v6639_v2  ;;  %v3834_v32 = vrot.slane %v3812_v19, %v6639_v2  ;;  %v1679_v31 = vrot.slane %v7328_v4, %v6617_v24  ;;  %v1683_v45 = vrot.slane %v7328_v4, %v6620_v28 }
 0x159   :  { %v3841_v39 = vrot.slane %v3813_v3, %v6639_v2  ;;  %v1687_v37 = vrot.slane %v7328_v4, %v6623_v34  ;;  %v4299_v49 = vcombine.low %v4291_v41, %v4298_v26  ;;  %v1691_v5 = vrot.slane %v7328_v4, %v6626_v42 }
 0x15a   :  { %v3842_v52 = vcombine.low %v3820_v13, %v3827_v12  ;;  %v1695_v38 = vrot.slane %v7328_v4, %v6629_v43  ;;  %v1699_v1 = vrot.slane %v7328_v4, %v6632_v47  ;;  %v1703_v15 = vrot.slane %v7328_v4, %v6635_v48 }
 0x15b   :  { %v3843_v7 = vcombine.low %v3834_v32, %v3841_v39  ;;  %v4349_v6 = vcombine.low %v1675_v21, %v1679_v31  ;;  %5778 = vperm.xlu0 %6264, %v4299_v49   ;;  %v4350_v9 = vcombine.low %v1683_v45, %v1687_v37  ;;  %v1387_v20 = vrot.slane %v7225_v44, %v6614_v23  ;;  %v283_v32 = vpop.xlane.xlu0 %282 }
 0x15c   :  { %v3850_v56 = vrot.slane %v3842_v52, %v6639_v2  ;;  %v4351_v25 = vcombine.low %v1691_v5, %v1695_v38  ;;  %v4352_v46 = vcombine.low %v1699_v1, %v1703_v15  ;;  %v1391_v53 = vrot.slane %v7225_v44, %v6617_v24 }
 0x15d   :  { %v3857_v29 = vrot.slane %v3843_v7, %v6639_v2  ;;  %v4359_v30 = vrot.slane %v4349_v6, %v6639_v2  ;;  %v4366_v4 = vrot.slane %v4350_v9, %v6639_v2  ;;  %v1395_v33 = vrot.slane %v7225_v44, %v6620_v28 }
 0x15e   :  { %v4373_v63 = vrot.slane %v4351_v25, %v6639_v2  ;;  %v1399_v8 = vrot.slane %v7225_v44, %v6623_v34  ;;  %v4380_v16 = vrot.slane %v4352_v46, %v6639_v2  ;;  %v1403_v58 = vrot.slane %v7225_v44, %v6626_v42 }
 0x15f   :  { %v3858_v40 = vcombine.low %v3850_v56, %v3857_v29  ;;  %v1407_v50 = vrot.slane %v7225_v44, %v6629_v43  ;;  %v4381_v22 = vcombine.low %v4359_v30, %v4366_v4  ;;  %v1411_v59 = vrot.slane %v7225_v44, %v6632_v47 }
 0x160   :  { %v1415_v51 = vrot.slane %v7225_v44, %v6635_v48  ;;  %v3908_v27 = vcombine.low %v1387_v20, %v1391_v53  ;;  %v7425_v54 = vadd.f32 %v6611_v18, %v277_v62  ;;  %v4382_v55 = vcombine.low %v4373_v63, %v4380_v16  ;;  %v7455_v20 = vpop.xlane.xlu1 %297 }
 0x161   :  { %5751 = vperm.xlu1 %6265, %v3858_v40   ;;  %v3909_v14 = vcombine.low %v1395_v33, %v1399_v8  ;;  %v3910_v10 = vcombine.low %v1403_v58, %v1407_v50  ;;  %v7428_v57 = vadd.f32 %v6611_v18, %v292_v36  ;;  %v4389_v19 = vrot.slane %v4381_v22, %v6639_v2  ;;  %v289_v33 = vpop.xlane.xlu0 %288 }
 0x162   :  { %v3911_v41 = vcombine.low %v1411_v59, %v1415_v51  ;;  %v3918_v3 = vrot.slane %v3908_v27, %v6639_v2  ;;  %v4396_v13 = vrot.slane %v4382_v55, %v6639_v2  ;;  %v1739_v12 = vrot.slane %v7378_v61, %v6614_v23 }
 0x163   :  { %v3925_v44 = vrot.slane %v3909_v14, %v6639_v2  ;;  %v3932_v26 = vrot.slane %v3910_v10, %v6639_v2  ;;  %v1743_v39 = vrot.slane %v7378_v61, %v6617_v24  ;;  %v1747_v31 = vrot.slane %v7378_v61, %v6620_v28 }
 0x164   :  { %v3939_v21 = vrot.slane %v3911_v41, %v6639_v2  ;;  %v1751_v45 = vrot.slane %v7378_v61, %v6623_v34  ;;  %v4397_v37 = vcombine.low %v4389_v19, %v4396_v13  ;;  %v1755_v52 = vrot.slane %v7378_v61, %v6626_v42  ;;  %v7484_v13 = vpop.xlane.xlu1 %303 }
 0x165   :  { %v3940_v49 = vcombine.low %v3918_v3, %v3925_v44  ;;  %v1759_v5 = vrot.slane %v7378_v61, %v6629_v43  ;;  %v1763_v7 = vrot.slane %v7378_v61, %v6632_v47  ;;  %v1767_v1 = vrot.slane %v7378_v61, %v6635_v48 }
 0x166   :  { %v3941_v38 = vcombine.low %v3932_v26, %v3939_v21  ;;  %v4447_v15 = vcombine.low %v1739_v12, %v1743_v39  ;;  %5784 = vperm.xlu0 %6264, %v4397_v37   ;;  %v4448_v56 = vcombine.low %v1747_v31, %v1751_v45  ;;  %v1451_v25 = vrot.slane %v7275_v35, %v6614_v23  ;;  %v295_v45 = vpop.xlane.xlu0 %294 }
 0x167   :  { %v3948_v6 = vrot.slane %v3940_v49, %v6639_v2  ;;  %v4449_v9 = vcombine.low %v1755_v52, %v1759_v5  ;;  %v4450_v46 = vcombine.low %v1763_v7, %v1767_v1  ;;  %v1455_v53 = vrot.slane %v7275_v35, %v6617_v24 }
 0x168   :  { %v3955_v29 = vrot.slane %v3941_v38, %v6639_v2  ;;  %v4457_v30 = vrot.slane %v4447_v15, %v6639_v2  ;;  %v4464_v61 = vrot.slane %v4448_v56, %v6639_v2  ;;  %v1459_v4 = vrot.slane %v7275_v35, %v6620_v28 }
 0x169   :  { %v4471_v62 = vrot.slane %v4449_v9, %v6639_v2  ;;  %v1463_v63 = vrot.slane %v7275_v35, %v6623_v34  ;;  %v4478_v36 = vrot.slane %v4450_v46, %v6639_v2  ;;  %v1467_v40 = vrot.slane %v7275_v35, %v6626_v42 }
 0x16a   :  { %v3956_v8 = vcombine.low %v3948_v6, %v3955_v29  ;;  %v1471_v16 = vrot.slane %v7275_v35, %v6629_v43  ;;  %v4479_v58 = vcombine.low %v4457_v30, %v4464_v61  ;;  %v1475_v50 = vrot.slane %v7275_v35, %v6632_v47  ;;  %v7513_v61 = vpop.xlane.xlu1 %309 }
 0x16b   :  { %v1479_v22 = vrot.slane %v7275_v35, %v6635_v48  ;;  %v4006_v59 = vcombine.low %v1451_v25, %v1455_v53  ;;  %v7477_v51 = vadd.f32 %v6611_v18, %v283_v32  ;;  %v4480_v27 = vcombine.low %v4471_v62, %v4478_v36 }
 0x16c   :  { %5757 = vperm.xlu1 %6265, %v3956_v8   ;;  %v4007_v55 = vcombine.low %v1459_v4, %v1463_v63  ;;  %v4008_v14 = vcombine.low %v1467_v40, %v1471_v16  ;;  %v7480_v10 = vadd.f32 %v6611_v18, %v289_v33  ;;  %v4487_v19 = vrot.slane %v4479_v58, %v6639_v2  ;;  %v301_v16 = vpop.xlane.xlu0 %300 }
 0x16d   :  { %v4009_v41 = vcombine.low %v1475_v50, %v1479_v22  ;;  %v4016_v3 = vrot.slane %v4006_v59, %v6639_v2  ;;  %v4494_v35 = vrot.slane %v4480_v27, %v6639_v2  ;;  %v1803_v12 = vrot.slane %v7428_v57, %v6614_v23 }
 0x16e   :  { %v4023_v44 = vrot.slane %v4007_v55, %v6639_v2  ;;  %v4030_v26 = vrot.slane %v4008_v14, %v6639_v2  ;;  %v1807_v21 = vrot.slane %v7428_v57, %v6617_v24  ;;  %v1811_v39 = vrot.slane %v7428_v57, %v6620_v28 }
 0x16f   :  { %v4037_v32 = vrot.slane %v4009_v41, %v6639_v2  ;;  %v1815_v31 = vrot.slane %v7428_v57, %v6623_v34  ;;  %v4495_v37 = vcombine.low %v4487_v19, %v4494_v35  ;;  %v1819_v52 = vrot.slane %v7428_v57, %v6626_v42 }
 0x170   :  { %v4038_v49 = vcombine.low %v4016_v3, %v4023_v44  ;;  %v1823_v5 = vrot.slane %v7428_v57, %v6629_v43  ;;  %v1827_v7 = vrot.slane %v7428_v57, %v6632_v47  ;;  %v1831_v1 = vrot.slane %v7428_v57, %v6635_v48 }
 0x171   :  { %v4039_v38 = vcombine.low %v4030_v26, %v4037_v32  ;;  %v4545_v15 = vcombine.low %v1803_v12, %v1807_v21  ;;  %5790 = vperm.xlu0 %6264, %v4495_v37   ;;  %v4546_v56 = vcombine.low %v1811_v39, %v1815_v31  ;;  %v1515_v25 = vrot.slane %v7325_v11, %v6614_v23  ;;  %v316_v21 = vpop.xlane.xlu1 %315 }
 0x172   :  { %v4046_v6 = vrot.slane %v4038_v49, %v6639_v2  ;;  %v4547_v9 = vcombine.low %v1819_v52, %v1823_v5  ;;  %v4548_v46 = vcombine.low %v1827_v7, %v1831_v1  ;;  %v1519_v53 = vrot.slane %v7325_v11, %v6617_v24 }
 0x173   :  { %v4053_v29 = vrot.slane %v4039_v38, %v6639_v2  ;;  %v4555_v30 = vrot.slane %v4545_v15, %v6639_v2  ;;  %v4562_v57 = vrot.slane %v4546_v56, %v6639_v2  ;;  %v1523_v4 = vrot.slane %v7325_v11, %v6620_v28  ;;  %v7555_v38 = vpop.xlane.xlu0 %306 }
 0x174   :  { %v4569_v62 = vrot.slane %v4547_v9, %v6639_v2  ;;  %v1527_v63 = vrot.slane %v7325_v11, %v6623_v34  ;;  %v4576_v8 = vrot.slane %v4548_v46, %v6639_v2  ;;  %v1531_v36 = vrot.slane %v7325_v11, %v6626_v42 }
 0x175   :  { %v4054_v33 = vcombine.low %v4046_v6, %v4053_v29  ;;  %v1535_v40 = vrot.slane %v7325_v11, %v6629_v43  ;;  %v4577_v58 = vcombine.low %v4555_v30, %v4562_v57  ;;  %v1539_v50 = vrot.slane %v7325_v11, %v6632_v47 }
 0x176   :  { %v1543_v22 = vrot.slane %v7325_v11, %v6635_v48  ;;  %v4104_v59 = vcombine.low %v1515_v25, %v1519_v53  ;;  %v7532_v27 = vadd.f32 %v6611_v18, %v7455_v20  ;;  %v4578_v55 = vcombine.low %v4569_v62, %v4576_v8 }
 0x177   :  { %5763 = vperm.xlu1 %6265, %v4054_v33   ;;  %v4105_v14 = vcombine.low %v1523_v4, %v1527_v63  ;;  %v4106_v19 = vcombine.low %v1531_v36, %v1535_v40  ;;  %v7535_v41 = vadd.f32 %v6611_v18, %v295_v45  ;;  %v4585_v3 = vrot.slane %v4577_v58, %v6639_v2  ;;  %v322_v36 = vpop.xlane.xlu1 %321 }
 0x178   :  { %v4107_v35 = vcombine.low %v1539_v50, %v1543_v22  ;;  %v4114_v44 = vrot.slane %v4104_v59, %v6639_v2  ;;  %v4592_v26 = vrot.slane %v4578_v55, %v6639_v2  ;;  %v1579_v20 = vrot.slane %v7375_v60, %v6614_v23  ;;  %v313_v55 = vpop.xlane.xlu0 %312 }
 0x179   :  { %v4121_v11 = vrot.slane %v4105_v14, %v6639_v2  ;;  %v4128_v12 = vrot.slane %v4106_v19, %v6639_v2  ;;  %v1583_v39 = vrot.slane %v7375_v60, %v6617_v24  ;;  %v1587_v31 = vrot.slane %v7375_v60, %v6620_v28 }
 0x17a   :  { %v4135_v32 = vrot.slane %v4107_v35, %v6639_v2  ;;  %v1591_v45 = vrot.slane %v7375_v60, %v6623_v34  ;;  %v4593_v37 = vcombine.low %v4585_v3, %v4592_v26  ;;  %v1595_v52 = vrot.slane %v7375_v60, %v6626_v42 }
 0x17b   :  { %v4136_v49 = vcombine.low %v4114_v44, %v4121_v11  ;;  %v1599_v5 = vrot.slane %v7375_v60, %v6629_v43  ;;  %v1603_v1 = vrot.slane %v7375_v60, %v6632_v47  ;;  %v1607_v15 = vrot.slane %v7375_v60, %v6635_v48 }
 0x17c   :  { %v4137_v7 = vcombine.low %v4128_v12, %v4135_v32  ;;  %v4202_v6 = vcombine.low %v1579_v20, %v1583_v39  ;;  %v7562_v56 = vadd.f32 %v6611_v18, %v301_v16  ;;  %5796 = vperm.xlu0 %6264, %v4593_v37   ;;  %v4203_v25 = vcombine.low %v1587_v31, %v1591_v45 }
 0x17d   :  { %v4144_v9 = vrot.slane %v4136_v49, %v6639_v2  ;;  %v4204_v29 = vcombine.low %v1595_v52, %v1599_v5  ;;  %v7567_v30 = vadd.f32 %v6611_v18, %v316_v21  ;;  %v4205_v53 = vcombine.low %v1603_v1, %v1607_v15 }
 0x17e   :  { %v4151_v46 = vrot.slane %v4137_v7, %v6639_v2  ;;  %v4212_v57 = vrot.slane %v4202_v6, %v6639_v2  ;;  %v4219_v62 = vrot.slane %v4203_v25, %v6639_v2  ;;  %v1643_v4 = vrot.slane %v7425_v54, %v6614_v23  ;;  %v328_v7 = vpop.xlane.xlu1 %327 }
 0x17f   :  { %v4226_v60 = vrot.slane %v4204_v29, %v6639_v2  ;;  %v1647_v63 = vrot.slane %v7425_v54, %v6617_v24  ;;  %v4233_v8 = vrot.slane %v4205_v53, %v6639_v2  ;;  %v1651_v40 = vrot.slane %v7425_v54, %v6620_v28  ;;  %v319_v29 = vpop.xlane.xlu0 %318 }
 0x180   :  { %v4152_v33 = vcombine.low %v4144_v9, %v4151_v46  ;;  %v1655_v16 = vrot.slane %v7425_v54, %v6623_v34  ;;  %v4234_v58 = vcombine.low %v4212_v57, %v4219_v62  ;;  %v1659_v50 = vrot.slane %v7425_v54, %v6626_v42 }
 0x181   :  { %v1663_v22 = vrot.slane %v7425_v54, %v6629_v43  ;;  %v1667_v59 = vrot.slane %v7425_v54, %v6632_v47  ;;  %v4235_v14 = vcombine.low %v4226_v60, %v4233_v8  ;;  %v1671_v19 = vrot.slane %v7425_v54, %v6635_v48 }
 0x182   :  { %5769 = vperm.xlu1 %6265, %v4152_v33   ;;  %v4300_v3 = vcombine.low %v1643_v4, %v1647_v63  ;;  %v4301_v35 = vcombine.low %v1651_v40, %v1655_v16  ;;  %v7590_v44 = vadd.f32 %v6611_v18, %v313_v55  ;;  %v4242_v26 = vrot.slane %v4234_v58, %v6639_v2 }
 0x183   :  { %v7594_v11 = vadd.f32 %v6611_v18, %v322_v36  ;;  %v4302_v12 = vcombine.low %v1659_v50, %v1663_v22  ;;  %v4249_v20 = vrot.slane %v4235_v14, %v6639_v2  ;;  %v4303_v32 = vcombine.low %v1667_v59, %v1671_v19 }
 0x184   :  { %v4310_v21 = vrot.slane %v4300_v3, %v6639_v2  ;;  %v4317_v39 = vrot.slane %v4301_v35, %v6639_v2  ;;  %v1707_v31 = vrot.slane %v7477_v51, %v6614_v23  ;;  %v1711_v45 = vrot.slane %v7477_v51, %v6617_v24 }
 0x185   :  { %v4324_v54 = vrot.slane %v4302_v12, %v6639_v2  ;;  %v1715_v37 = vrot.slane %v7477_v51, %v6620_v28  ;;  %v4250_v49 = vcombine.low %v4242_v26, %v4249_v20  ;;  %v4331_v52 = vrot.slane %v4303_v32, %v6639_v2 }
 0x186   :  { %v4332_v5 = vcombine.low %v4310_v21, %v4317_v39  ;;  %v1719_v1 = vrot.slane %v7477_v51, %v6623_v34  ;;  %v1723_v15 = vrot.slane %v7477_v51, %v6626_v42  ;;  %v1727_v6 = vrot.slane %v7477_v51, %v6629_v43 }
 0x187   :  { %v1731_v9 = vrot.slane %v7477_v51, %v6632_v47  ;;  %v1735_v25 = vrot.slane %v7477_v51, %v6635_v48  ;;  %5775 = vperm.xlu1 %6265, %v4250_v49   ;;  %v4333_v46 = vcombine.low %v4324_v54, %v4331_v52  ;;  %v4398_v57 = vcombine.low %v1707_v31, %v1711_v45 }
 0x188   :  { %v4340_v53 = vrot.slane %v4332_v5, %v6639_v2  ;;  %v4399_v62 = vcombine.low %v1715_v37, %v1719_v1  ;;  %v7619_v60 = vadd.f32 %v6611_v18, %v319_v29  ;;  %v7622_v4 = vadd.f32 %v6611_v18, %v328_v7  ;;  %v334_v1 = vpop.xlane.xlu1 %333 }
 0x189   :  { %v4400_v63 = vcombine.low %v1723_v15, %v1727_v6  ;;  %v4401_v33 = vcombine.low %v1731_v9, %v1735_v25  ;;  %v4347_v8 = vrot.slane %v4333_v46, %v6639_v2  ;;  %v4408_v36 = vrot.slane %v4398_v57, %v6639_v2  ;;  %v325_v25 = vpop.xlane.xlu0 %324 }
 0x18a   :  { %v4415_v51 = vrot.slane %v4399_v62, %v6639_v2  ;;  %v2059_v40 = vrot.slane %v7567_v30, %v6614_v23  ;;  %v2063_v50 = vrot.slane %v7567_v30, %v6617_v24  ;;  %v2067_v22 = vrot.slane %v7567_v30, %v6620_v28 }
 0x18b   :  { %v4422_v16 = vrot.slane %v4400_v63, %v6639_v2  ;;  %v4429_v58 = vrot.slane %v4401_v33, %v6639_v2  ;;  %v4348_v59 = vcombine.low %v4340_v53, %v4347_v8  ;;  %v2071_v14 = vrot.slane %v7567_v30, %v6623_v34 }
 0x18c   :  { %v4430_v55 = vcombine.low %v4408_v36, %v4415_v51  ;;  %v2075_v19 = vrot.slane %v7567_v30, %v6626_v42  ;;  %v2079_v35 = vrot.slane %v7567_v30, %v6629_v43  ;;  %v2083_v26 = vrot.slane %v7567_v30, %v6632_v47 }
 0x18d   :  { %v4431_v3 = vcombine.low %v4422_v16, %v4429_v58  ;;  %v2087_v12 = vrot.slane %v7567_v30, %v6635_v48  ;;  %5781 = vperm.xlu1 %6265, %v4348_v59   ;;  %v4937_v32 = vcombine.low %v2059_v40, %v2063_v50  ;;  %v4938_v21 = vcombine.low %v2067_v22, %v2071_v14 }
 0x18e   :  { %v4438_v20 = vrot.slane %v4430_v55, %v6639_v2  ;;  %v1771_v39 = vrot.slane %v7480_v10, %v6614_v23  ;;  %v4939_v31 = vcombine.low %v2075_v19, %v2079_v35  ;;  %v1775_v37 = vrot.slane %v7480_v10, %v6617_v24 }
 0x18f   :  { %v4445_v54 = vrot.slane %v4431_v3, %v6639_v2  ;;  %v4940_v45 = vcombine.low %v2083_v26, %v2087_v12  ;;  %v4947_v49 = vrot.slane %v4937_v32, %v6639_v2  ;;  %v4954_v52 = vrot.slane %v4938_v21, %v6639_v2 }
 0x190   :  { %v1779_v30 = vrot.slane %v7480_v10, %v6620_v28  ;;  %v1783_v5 = vrot.slane %v7480_v10, %v6623_v34  ;;  %v4961_v15 = vrot.slane %v4939_v31, %v6639_v2  ;;  %v1787_v9 = vrot.slane %v7480_v10, %v6626_v42 }
 0x191   :  { %v4446_v7 = vcombine.low %v4438_v20, %v4445_v54  ;;  %v4968_v6 = vrot.slane %v4940_v45, %v6639_v2  ;;  %v4969_v29 = vcombine.low %v4947_v49, %v4954_v52  ;;  %v1791_v46 = vrot.slane %v7480_v10, %v6629_v43 }
 0x192   :  { %v1795_v53 = vrot.slane %v7480_v10, %v6632_v47  ;;  %v1799_v57 = vrot.slane %v7480_v10, %v6635_v48  ;;  %v7668_v62 = vadd.f32 %v6611_v18, %v325_v25  ;;  %v4496_v33 = vcombine.low %v1771_v39, %v1775_v37 }
 0x193   :  { %5787 = vperm.xlu1 %6265, %v4446_v7   ;;  %v4970_v63 = vcombine.low %v4961_v15, %v4968_v6  ;;  %v4497_v8 = vcombine.low %v1779_v30, %v1783_v5  ;;  %v7671_v36 = vadd.f32 %v6611_v18, %v334_v1  ;;  %v4977_v51 = vrot.slane %v4969_v29, %v6639_v2 }
 0x194   :  { %v4498_v40 = vcombine.low %v1787_v9, %v1791_v46  ;;  %v4499_v16 = vcombine.low %v1795_v53, %v1799_v57  ;;  %v4506_v50 = vrot.slane %v4496_v33, %v6639_v2  ;;  %v2123_v22 = vrot.slane %v7594_v11, %v6614_v23  ;;  %v331_v46 = vpop.xlane.xlu0 %330 }
 0x195   :  { %v4984_v58 = vrot.slane %v4970_v63, %v6639_v2  ;;  %v4513_v10 = vrot.slane %v4497_v8, %v6639_v2  ;;  %v2127_v14 = vrot.slane %v7594_v11, %v6617_v24  ;;  %v2131_v19 = vrot.slane %v7594_v11, %v6620_v28 }
 0x196   :  { %v4520_v59 = vrot.slane %v4498_v40, %v6639_v2  ;;  %v4527_v55 = vrot.slane %v4499_v16, %v6639_v2  ;;  %v2135_v26 = vrot.slane %v7594_v11, %v6623_v34  ;;  %v2139_v12 = vrot.slane %v7594_v11, %v6626_v42 }
 0x197   :  { %v4985_v3 = vcombine.low %v4977_v51, %v4984_v58  ;;  %v4528_v35 = vcombine.low %v4506_v50, %v4513_v10  ;;  %v2143_v32 = vrot.slane %v7594_v11, %v6629_v43  ;;  %v2147_v21 = vrot.slane %v7594_v11, %v6632_v47 }
 0x198   :  { %v4529_v20 = vcombine.low %v4520_v59, %v4527_v55  ;;  %v2151_v39 = vrot.slane %v7594_v11, %v6635_v48  ;;  %v5035_v31 = vcombine.low %v2123_v22, %v2127_v14  ;;  %v5036_v45 = vcombine.low %v2131_v19, %v2135_v26 }
 0x199   :  { %5820 = vperm.xlu0 %6264, %v4985_v3   ;;  %v4536_v54 = vrot.slane %v4528_v35, %v6639_v2  ;;  %v2027_v37 = vrot.slane %v7590_v44, %v6614_v23  ;;  %v5037_v52 = vcombine.low %v2139_v12, %v2143_v32  ;;  %v2031_v5 = vrot.slane %v7590_v44, %v6617_v24 }
 0x19a   :  { %v4543_v49 = vrot.slane %v4529_v20, %v6639_v2  ;;  %v5038_v30 = vcombine.low %v2147_v21, %v2151_v39  ;;  %v5045_v7 = vrot.slane %v5035_v31, %v6639_v2  ;;  %v5052_v1 = vrot.slane %v5036_v45, %v6639_v2 }
 0x19b   :  { %v2035_v11 = vrot.slane %v7590_v44, %v6620_v28  ;;  %v2039_v15 = vrot.slane %v7590_v44, %v6623_v34  ;;  %v5059_v9 = vrot.slane %v5037_v52, %v6639_v2  ;;  %v2043_v29 = vrot.slane %v7590_v44, %v6626_v42 }
 0x19c   :  { %v4544_v6 = vcombine.low %v4536_v54, %v4543_v49  ;;  %v5066_v25 = vrot.slane %v5038_v30, %v6639_v2  ;;  %v5067_v53 = vcombine.low %v5045_v7, %v5052_v1  ;;  %v2047_v57 = vrot.slane %v7590_v44, %v6629_v43 }
 0x19d   :  { %v2051_v63 = vrot.slane %v7590_v44, %v6632_v47  ;;  %v2055_v33 = vrot.slane %v7590_v44, %v6635_v48  ;;  %v7718_v8 = vadd.f32 %v6611_v18, %v331_v46  ;;  %v4888_v40 = vcombine.low %v2027_v37, %v2031_v5 }
 0x19e   :  { %5793 = vperm.xlu1 %6265, %v4544_v6   ;;  %v5068_v51 = vcombine.low %v5059_v9, %v5066_v25  ;;  %v4889_v16 = vcombine.low %v2035_v11, %v2039_v15  ;;  %v5075_v58 = vrot.slane %v5067_v53, %v6639_v2  ;;  %v4890_v50 = vcombine.low %v2043_v29, %v2047_v57  ;;  %v340_v15 = vpop.xlane.xlu1 %339 }
 0x19f   :  { %v4891_v10 = vcombine.low %v2051_v63, %v2055_v33  ;;  %v2187_v22 = vrot.slane %v7622_v4, %v6614_v23  ;;  %v4898_v55 = vrot.slane %v4888_v40, %v6639_v2  ;;  %v2191_v14 = vrot.slane %v7622_v4, %v6617_v24 }
 0x1a0   :  { %v5082_v59 = vrot.slane %v5068_v51, %v6639_v2  ;;  %v4905_v44 = vrot.slane %v4889_v16, %v6639_v2  ;;  %v4912_v19 = vrot.slane %v4890_v50, %v6639_v2  ;;  %v2195_v35 = vrot.slane %v7622_v4, %v6620_v28 }
 0x1a1   :  { %v4919_v3 = vrot.slane %v4891_v10, %v6639_v2  ;;  %v2199_v26 = vrot.slane %v7622_v4, %v6623_v34  ;;  %v2203_v32 = vrot.slane %v7622_v4, %v6626_v42  ;;  %v2207_v21 = vrot.slane %v7622_v4, %v6629_v43 }
 0x1a2   :  { %v5083_v12 = vcombine.low %v5075_v58, %v5082_v59  ;;  %v4920_v20 = vcombine.low %v4898_v55, %v4905_v44  ;;  %v2211_v54 = vrot.slane %v7622_v4, %v6632_v47  ;;  %v2215_v31 = vrot.slane %v7622_v4, %v6635_v48  ;;  %v7769_v44 = vpop.xlane.xlu1 %345 }
 0x1a3   :  { %v4921_v39 = vcombine.low %v4912_v19, %v4919_v3  ;;  %v5133_v45 = vcombine.low %v2187_v22, %v2191_v14  ;;  %v5134_v49 = vcombine.low %v2195_v35, %v2199_v26  ;;  %v5135_v52 = vcombine.low %v2203_v32, %v2207_v21 }
 0x1a4   :  { %5826 = vperm.xlu0 %6264, %v5083_v12   ;;  %v4928_v37 = vrot.slane %v4920_v20, %v6639_v2  ;;  %v2091_v30 = vrot.slane %v7619_v60, %v6614_v23  ;;  %v5136_v7 = vcombine.low %v2211_v54, %v2215_v31  ;;  %v2095_v11 = vrot.slane %v7619_v60, %v6617_v24 }
 0x1a5   :  { %v4935_v5 = vrot.slane %v4921_v39, %v6639_v2  ;;  %v5143_v1 = vrot.slane %v5133_v45, %v6639_v2  ;;  %v5150_v4 = vrot.slane %v5134_v49, %v6639_v2  ;;  %v5157_v6 = vrot.slane %v5135_v52, %v6639_v2 }
 0x1a6   :  { %v2099_v9 = vrot.slane %v7619_v60, %v6620_v28  ;;  %v2103_v25 = vrot.slane %v7619_v60, %v6623_v34  ;;  %v5164_v46 = vrot.slane %v5136_v7, %v6639_v2  ;;  %v2107_v53 = vrot.slane %v7619_v60, %v6626_v42 }
 0x1a7   :  { %v4936_v29 = vcombine.low %v4928_v37, %v4935_v5  ;;  %v2111_v57 = vrot.slane %v7619_v60, %v6629_v43  ;;  %v5165_v63 = vcombine.low %v5143_v1, %v5150_v4  ;;  %v2115_v33 = vrot.slane %v7619_v60, %v6632_v47 }
 0x1a8   :  { %v2119_v51 = vrot.slane %v7619_v60, %v6635_v48  ;;  %v4986_v40 = vcombine.low %v2091_v30, %v2095_v11  ;;  %v7765_v16 = vadd.f32 %v6611_v18, %v340_v15  ;;  %v5166_v58 = vcombine.low %v5157_v6, %v5164_v46  ;;  %v7791_v30 = vpop.xlane.xlu1 %351 }
 0x1a9   :  { %5817 = vperm.xlu1 %6265, %v4936_v29   ;;  %v4987_v50 = vcombine.low %v2099_v9, %v2103_v25  ;;  %v4988_v10 = vcombine.low %v2107_v53, %v2111_v57  ;;  %v5173_v22 = vrot.slane %v5165_v63, %v6639_v2  ;;  %v2251_v14 = vrot.slane %v7671_v36, %v6614_v23 }
 0x1aa   :  { %v4989_v59 = vcombine.low %v2115_v33, %v2119_v51  ;;  %v4996_v55 = vrot.slane %v4986_v40, %v6639_v2  ;;  %v5180_v60 = vrot.slane %v5166_v58, %v6639_v2  ;;  %v2255_v35 = vrot.slane %v7671_v36, %v6617_v24  ;;  %v337_v40 = vpop.xlane.xlu0 %336 }
 0x1ab   :  { %v5003_v19 = vrot.slane %v4987_v50, %v6639_v2  ;;  %v5010_v3 = vrot.slane %v4988_v10, %v6639_v2  ;;  %v2259_v12 = vrot.slane %v7671_v36, %v6620_v28  ;;  %v2263_v20 = vrot.slane %v7671_v36, %v6623_v34 }
 0x1ac   :  { %v5017_v26 = vrot.slane %v4989_v59, %v6639_v2  ;;  %v2267_v32 = vrot.slane %v7671_v36, %v6626_v42  ;;  %v5181_v21 = vcombine.low %v5173_v22, %v5180_v60  ;;  %v2271_v54 = vrot.slane %v7671_v36, %v6629_v43  ;;  %v7811_v51 = vpop.xlane.xlu1 %357 }
 0x1ad   :  { %v5018_v39 = vcombine.low %v4996_v55, %v5003_v19  ;;  %v2275_v31 = vrot.slane %v7671_v36, %v6632_v47  ;;  %v2279_v37 = vrot.slane %v7671_v36, %v6635_v48  ;;  %v5231_v49 = vcombine.low %v2251_v14, %v2255_v35 }
 0x1ae   :  { %v5019_v45 = vcombine.low %v5010_v3, %v5017_v26  ;;  %v5232_v52 = vcombine.low %v2259_v12, %v2263_v20  ;;  %5832 = vperm.xlu0 %6264, %v5181_v21   ;;  %v5233_v7 = vcombine.low %v2267_v32, %v2271_v54  ;;  %v2155_v1 = vrot.slane %v7668_v62, %v6614_v23 }
 0x1af   :  { %v5026_v5 = vrot.slane %v5018_v39, %v6639_v2  ;;  %v2159_v11 = vrot.slane %v7668_v62, %v6617_v24  ;;  %v5234_v4 = vcombine.low %v2275_v31, %v2279_v37  ;;  %v5241_v6 = vrot.slane %v5231_v49, %v6639_v2 }
 0x1b0   :  { %v5033_v15 = vrot.slane %v5019_v45, %v6639_v2  ;;  %v5248_v36 = vrot.slane %v5232_v52, %v6639_v2  ;;  %v5255_v9 = vrot.slane %v5233_v7, %v6639_v2  ;;  %v2163_v25 = vrot.slane %v7668_v62, %v6620_v28  ;;  %v7831_v21 = vpop.permute.xlu1 %5676 }
 0x1b1   :  { %v2167_v29 = vrot.slane %v7668_v62, %v6623_v34  ;;  %v2171_v46 = vrot.slane %v7668_v62, %v6626_v42  ;;  %v5262_v57 = vrot.slane %v5234_v4, %v6639_v2  ;;  %v2175_v33 = vrot.slane %v7668_v62, %v6629_v43 }
 0x1b2   :  { %v5034_v53 = vcombine.low %v5026_v5, %v5033_v15  ;;  %v5263_v63 = vcombine.low %v5241_v6, %v5248_v36  ;;  %v2179_v58 = vrot.slane %v7668_v62, %v6632_v47  ;;  %v2183_v50 = vrot.slane %v7668_v62, %v6635_v48 }
 0x1b3   :  { %v5084_v10 = vcombine.low %v2155_v1, %v2159_v11  ;;  %v5085_v22 = vcombine.low %v2163_v25, %v2167_v29  ;;  %v7818_v59 = vadd.f32 %v6611_v18, %v337_v40  ;;  %v5264_v55 = vcombine.low %v5255_v9, %v5262_v57 }
 0x1b4   :  { %5823 = vperm.xlu1 %6265, %v5034_v53   ;;  %v5271_v14 = vrot.slane %v5263_v63, %v6639_v2  ;;  %v5086_v60 = vcombine.low %v2171_v46, %v2175_v33  ;;  %v5087_v19 = vcombine.low %v2179_v58, %v2183_v50  ;;  %v2315_v26 = vrot.slane %v7765_v16, %v6614_v23  ;;  %v343_v53 = vpop.xlane.xlu0 %342  ;;  %v7860_v58 = vpop.permute.xlu1 %5679 }
 0x1b5   :  { %v5094_v3 = vrot.slane %v5084_v10, %v6639_v2  ;;  %v5101_v35 = vrot.slane %v5085_v22, %v6639_v2  ;;  %v5278_v62 = vrot.slane %v5264_v55, %v6639_v2  ;;  %v2319_v20 = vrot.slane %v7765_v16, %v6617_v24 }
 0x1b6   :  { %v5108_v12 = vrot.slane %v5086_v60, %v6639_v2  ;;  %v2323_v32 = vrot.slane %v7765_v16, %v6620_v28  ;;  %v5115_v39 = vrot.slane %v5087_v19, %v6639_v2  ;;  %v2327_v31 = vrot.slane %v7765_v16, %v6623_v34 }
 0x1b7   :  { %v5116_v54 = vcombine.low %v5094_v3, %v5101_v35  ;;  %v2331_v45 = vrot.slane %v7765_v16, %v6626_v42  ;;  %v5279_v37 = vcombine.low %v5271_v14, %v5278_v62  ;;  %v2335_v49 = vrot.slane %v7765_v16, %v6629_v43 }
 0x1b8   :  { %v2339_v52 = vrot.slane %v7765_v16, %v6632_v47  ;;  %v2343_v5 = vrot.slane %v7765_v16, %v6635_v48  ;;  %v5117_v7 = vcombine.low %v5108_v12, %v5115_v39  ;;  %v5329_v11 = vcombine.low %v2315_v26, %v2319_v20 }
 0x1b9   :  { %v5124_v1 = vrot.slane %v5116_v54, %v6639_v2  ;;  %v5330_v15 = vcombine.low %v2323_v32, %v2327_v31  ;;  %5838 = vperm.xlu0 %6264, %v5279_v37   ;;  %v5331_v4 = vcombine.low %v2331_v45, %v2335_v49  ;;  %v2219_v36 = vrot.slane %v7718_v8, %v6614_v23 }
 0x1ba   :  { %v5332_v6 = vcombine.low %v2339_v52, %v2343_v5  ;;  %v2223_v9 = vrot.slane %v7718_v8, %v6617_v24  ;;  %v5131_v25 = vrot.slane %v5117_v7, %v6639_v2  ;;  %v5339_v29 = vrot.slane %v5329_v11, %v6639_v2 }
 0x1bb   :  { %v5346_v16 = vrot.slane %v5330_v15, %v6639_v2  ;;  %v2227_v46 = vrot.slane %v7718_v8, %v6620_v28  ;;  %v5353_v57 = vrot.slane %v5331_v4, %v6639_v2  ;;  %v2231_v33 = vrot.slane %v7718_v8, %v6623_v34 }
 0x1bc   :  { %v5360_v63 = vrot.slane %v5332_v6, %v6639_v2  ;;  %v2235_v40 = vrot.slane %v7718_v8, %v6626_v42  ;;  %v5132_v50 = vcombine.low %v5124_v1, %v5131_v25  ;;  %v2239_v22 = vrot.slane %v7718_v8, %v6629_v43  ;;  %v7885_v1 = vpop.permute.xlu1 %5682 }
 0x1bd   :  { %v5361_v10 = vcombine.low %v5339_v29, %v5346_v16  ;;  %v2243_v55 = vrot.slane %v7718_v8, %v6632_v47  ;;  %v2247_v60 = vrot.slane %v7718_v8, %v6635_v48  ;;  %v5182_v19 = vcombine.low %v2219_v36, %v2223_v9 }
 0x1be   :  { %v5362_v14 = vcombine.low %v5353_v57, %v5360_v63  ;;  %v5183_v3 = vcombine.low %v2227_v46, %v2231_v33  ;;  %v418_v35 = vadd.f32 %v6611_v18, %v343_v53  ;;  %5829 = vperm.xlu1 %6265, %v5132_v50   ;;  %v5184_v62 = vcombine.low %v2235_v40, %v2239_v22 }
 0x1bf   :  { %v5369_v26 = vrot.slane %v5361_v10, %v6639_v2  ;;  %v2283_v12 = vrot.slane %v7818_v59, %v6614_v23  ;;  %v5185_v32 = vcombine.low %v2243_v55, %v2247_v60  ;;  %v5192_v39 = vrot.slane %v5182_v19, %v6639_v2 }
 0x1c0   :  { %v5376_v20 = vrot.slane %v5362_v14, %v6639_v2  ;;  %v5199_v54 = vrot.slane %v5183_v3, %v6639_v2  ;;  %v5206_v8 = vrot.slane %v5184_v62, %v6639_v2  ;;  %v2287_v31 = vrot.slane %v7818_v59, %v6617_v24 }
 0x1c1   :  { %v2291_v45 = vrot.slane %v7818_v59, %v6620_v28  ;;  %v2295_v37 = vrot.slane %v7818_v59, %v6623_v34  ;;  %v5213_v52 = vrot.slane %v5185_v32, %v6639_v2  ;;  %v2299_v7 = vrot.slane %v7818_v59, %v6626_v42 }
 0x1c2   :  { %v5377_v49 = vcombine.low %v5369_v26, %v5376_v20  ;;  %v5214_v5 = vcombine.low %v5192_v39, %v5199_v54  ;;  %v2303_v11 = vrot.slane %v7818_v59, %v6629_v43  ;;  %v2307_v15 = vrot.slane %v7818_v59, %v6632_v47  ;;  %v7907_v26 = vpop.permute.xlu1 %5685 }
 0x1c3   :  { %v2311_v4 = vrot.slane %v7818_v59, %v6635_v48  ;;  %v5280_v6 = vcombine.low %v2283_v12, %v2287_v31  ;;  %v5215_v36 = vcombine.low %v5206_v8, %v5213_v52  ;;  %v5281_v25 = vcombine.low %v2291_v45, %v2295_v37 }
 0x1c4   :  { %5844 = vperm.xlu0 %6264, %v5377_v49   ;;  %v5222_v9 = vrot.slane %v5214_v5, %v6639_v2  ;;  %v2347_v29 = vrot.slane %v418_v35, %v6614_v23  ;;  %v5282_v16 = vcombine.low %v2299_v7, %v2303_v11  ;;  %v2351_v57 = vrot.slane %v418_v35, %v6617_v24 }
 0x1c5   :  { %v5283_v46 = vcombine.low %v2307_v15, %v2311_v4  ;;  %v5290_v53 = vrot.slane %v5280_v6, %v6639_v2  ;;  %v5229_v63 = vrot.slane %v5215_v36, %v6639_v2  ;;  %v5297_v33 = vrot.slane %v5281_v25, %v6639_v2 }
 0x1c6   :  { %v2355_v59 = vrot.slane %v418_v35, %v6620_v28  ;;  %v2359_v40 = vrot.slane %v418_v35, %v6623_v34  ;;  %v5304_v50 = vrot.slane %v5282_v16, %v6639_v2  ;;  %v2363_v22 = vrot.slane %v418_v35, %v6626_v42  ;;  %v7933_v16 = vpop.permute.xlu1 %5688 }
 0x1c7   :  { %v5311_v10 = vrot.slane %v5283_v46, %v6639_v2  ;;  %v2367_v55 = vrot.slane %v418_v35, %v6629_v43  ;;  %v5230_v14 = vcombine.low %v5222_v9, %v5229_v63  ;;  %v5312_v60 = vcombine.low %v5290_v53, %v5297_v33 }
 0x1c8   :  { %v2371_v19 = vrot.slane %v418_v35, %v6632_v47  ;;  %v2375_v3 = vrot.slane %v418_v35, %v6635_v48  ;;  %v5378_v12 = vcombine.low %v2347_v29, %v2351_v57  ;;  %v5379_v20 = vcombine.low %v2355_v59, %v2359_v40 }
 0x1c9   :  { %v5313_v62 = vcombine.low %v5304_v50, %v5311_v10  ;;  %v5380_v32 = vcombine.low %v2363_v22, %v2367_v55  ;;  %v419_v39 = vadd.f32 %v6611_v18, %v7769_v44  ;;  %5835 = vperm.xlu1 %6265, %v5230_v14   ;;  %v5320_v54 = vrot.slane %v5312_v60, %v6639_v2  ;;  %v349_v10 = vpop.xlane.xlu0 %348 }
 0x1ca   :  { %v5381_v8 = vcombine.low %v2371_v19, %v2375_v3  ;;  %v1835_v31 = vrot.slane %v7535_v41, %v6614_v23  ;;  %v5388_v35 = vrot.slane %v5378_v12, %v6639_v2  ;;  %v5395_v37 = vrot.slane %v5379_v20, %v6639_v2 }
 0x1cb   :  { %v5327_v45 = vrot.slane %v5313_v62, %v6639_v2  ;;  %v5402_v49 = vrot.slane %v5380_v32, %v6639_v2  ;;  %v1839_v44 = vrot.slane %v7535_v41, %v6617_v24  ;;  %v1843_v5 = vrot.slane %v7535_v41, %v6620_v28 }
 0x1cc   :  { %v5409_v52 = vrot.slane %v5381_v8, %v6639_v2  ;;  %v1847_v7 = vrot.slane %v7535_v41, %v6623_v34  ;;  %v5410_v15 = vcombine.low %v5388_v35, %v5395_v37  ;;  %v1851_v4 = vrot.slane %v7535_v41, %v6626_v42  ;;  %v7950_v37 = vpop.permute.xlu1 %5691 }
 0x1cd   :  { %v5328_v11 = vcombine.low %v5320_v54, %v5327_v45  ;;  %v1855_v6 = vrot.slane %v7535_v41, %v6629_v43  ;;  %v1859_v9 = vrot.slane %v7535_v41, %v6632_v47  ;;  %v1863_v25 = vrot.slane %v7535_v41, %v6635_v48 }
 0x1ce   :  { %v5411_v36 = vcombine.low %v5402_v49, %v5409_v52  ;;  %v4594_v29 = vcombine.low %v1835_v31, %v1839_v44  ;;  %v5418_v46 = vrot.slane %v5410_v15, %v6639_v2  ;;  %v4595_v53 = vcombine.low %v1843_v5, %v1847_v7 }
 0x1cf   :  { %5841 = vperm.xlu1 %6265, %v5328_v11   ;;  %v4596_v57 = vcombine.low %v1851_v4, %v1855_v6  ;;  %v2379_v63 = vrot.slane %v419_v39, %v6614_v23  ;;  %v4597_v59 = vcombine.low %v1859_v9, %v1863_v25  ;;  %v2383_v50 = vrot.slane %v419_v39, %v6617_v24 }
 0x1d0   :  { %v5425_v33 = vrot.slane %v5411_v36, %v6639_v2  ;;  %v4604_v40 = vrot.slane %v4594_v29, %v6639_v2  ;;  %v4611_v41 = vrot.slane %v4595_v53, %v6639_v2  ;;  %v2387_v55 = vrot.slane %v419_v39, %v6620_v28 }
 0x1d1   :  { %v4618_v22 = vrot.slane %v4596_v57, %v6639_v2  ;;  %v2391_v14 = vrot.slane %v419_v39, %v6623_v34  ;;  %v4625_v19 = vrot.slane %v4597_v59, %v6639_v2  ;;  %v2395_v3 = vrot.slane %v419_v39, %v6626_v42 }
 0x1d2   :  { %v5426_v60 = vcombine.low %v5418_v46, %v5425_v33  ;;  %v2399_v62 = vrot.slane %v419_v39, %v6629_v43  ;;  %v4626_v12 = vcombine.low %v4604_v40, %v4611_v41  ;;  %v2403_v20 = vrot.slane %v419_v39, %v6632_v47 }
 0x1d3   :  { %v2407_v32 = vrot.slane %v419_v39, %v6635_v48  ;;  %v5427_v54 = vcombine.low %v2379_v63, %v2383_v50  ;;  %v420_v8 = vadd.f32 %v6611_v18, %v349_v10  ;;  %v4627_v31 = vcombine.low %v4618_v22, %v4625_v19  ;;  %v7977_v22 = vpop.permute.xlu1 %5694 }
 0x1d4   :  { %5847 = vperm.xlu0 %6264, %v5426_v60   ;;  %v5428_v45 = vcombine.low %v2387_v55, %v2391_v14  ;;  %v5429_v35 = vcombine.low %v2395_v3, %v2399_v62  ;;  %v4634_v49 = vrot.slane %v4626_v12, %v6639_v2  ;;  %v1867_v5 = vrot.slane %v7532_v27, %v6614_v23  ;;  %v7979_v55 = vpop.xlane.xlu0 %354 }
 0x1d5   :  { %v5430_v52 = vcombine.low %v2403_v20, %v2407_v32  ;;  %v5437_v44 = vrot.slane %v5427_v54, %v6639_v2  ;;  %v4641_v7 = vrot.slane %v4627_v31, %v6639_v2  ;;  %v1871_v15 = vrot.slane %v7532_v27, %v6617_v24 }
 0x1d6   :  { %v5444_v39 = vrot.slane %v5428_v45, %v6639_v2  ;;  %v5451_v11 = vrot.slane %v5429_v35, %v6639_v2  ;;  %v1875_v6 = vrot.slane %v7532_v27, %v6620_v28  ;;  %v1879_v36 = vrot.slane %v7532_v27, %v6623_v34 }
 0x1d7   :  { %v5458_v4 = vrot.slane %v5430_v52, %v6639_v2  ;;  %v1883_v9 = vrot.slane %v7532_v27, %v6626_v42  ;;  %v4642_v25 = vcombine.low %v4634_v49, %v4641_v7  ;;  %v1887_v46 = vrot.slane %v7532_v27, %v6629_v43 }
 0x1d8   :  { %v5459_v29 = vcombine.low %v5437_v44, %v5444_v39  ;;  %v1891_v53 = vrot.slane %v7532_v27, %v6632_v47  ;;  %v1895_v63 = vrot.slane %v7532_v27, %v6635_v48  ;;  %v4643_v33 = vcombine.low %v1867_v5, %v1871_v15 }
 0x1d9   :  { %v5460_v57 = vcombine.low %v5451_v11, %v5458_v4  ;;  %v4644_v59 = vcombine.low %v1875_v6, %v1879_v36  ;;  %5799 = vperm.xlu1 %6265, %v4642_v25   ;;  %v4645_v50 = vcombine.low %v1883_v9, %v1887_v46  ;;  %v2411_v10 = vrot.slane %v420_v8, %v6614_v23  ;;  %v7993_v11 = vpop.permute.xlu0 %5673  ;;  %v7999_v9 = vpop.permute.xlu1 %5697 }
 0x1da   :  { %v5467_v40 = vrot.slane %v5459_v29, %v6639_v2  ;;  %v2415_v41 = vrot.slane %v420_v8, %v6617_v24  ;;  %v4646_v60 = vcombine.low %v1891_v53, %v1895_v63  ;;  %v4653_v19 = vrot.slane %v4643_v33, %v6639_v2 }
 0x1db   :  { %v5474_v14 = vrot.slane %v5460_v57, %v6639_v2  ;;  %v4660_v27 = vrot.slane %v4644_v59, %v6639_v2  ;;  %v4667_v3 = vrot.slane %v4645_v50, %v6639_v2  ;;  %v2419_v62 = vrot.slane %v420_v8, %v6620_v28 }
 0x1dc   :  { %v2423_v12 = vrot.slane %v420_v8, %v6623_v34  ;;  %v2427_v20 = vrot.slane %v420_v8, %v6626_v42  ;;  %v4674_v54 = vrot.slane %v4646_v60, %v6639_v2  ;;  %v2431_v45 = vrot.slane %v420_v8, %v6629_v43 }
 0x1dd   :  { %v5475_v32 = vcombine.low %v5467_v40, %v5474_v14  ;;  %v4675_v31 = vcombine.low %v4653_v19, %v4660_v27  ;;  %v2435_v35 = vrot.slane %v420_v8, %v6632_v47  ;;  %v2439_v49 = vrot.slane %v420_v8, %v6635_v48 }
 0x1de   :  { %v5476_v52 = vcombine.low %v2411_v10, %v2415_v41  ;;  %v5477_v44 = vcombine.low %v2419_v62, %v2423_v12  ;;  %v4676_v5 = vcombine.low %v4667_v3, %v4674_v54  ;;  %v5478_v39 = vcombine.low %v2427_v20, %v2431_v45  ;;  %v8020_v10 = vpop.permute.xlu0 %5700 }
 0x1df   :  { %5850 = vperm.xlu0 %6264, %v5475_v32   ;;  %v4683_v7 = vrot.slane %v4675_v31, %v6639_v2  ;;  %v421_v15 = vadd.f32 %v6611_v18, %v7791_v30  ;;  %v5479_v4 = vcombine.low %v2435_v35, %v2439_v49  ;;  %v1899_v29 = vrot.slane %v7562_v56, %v6614_v23  ;;  %v8031_v31 = vpop.permute.xlu1 %5703 }
 0x1e0   :  { %v5486_v6 = vrot.slane %v5476_v52, %v6639_v2  ;;  %v5493_v36 = vrot.slane %v5477_v44, %v6639_v2  ;;  %v4690_v8 = vrot.slane %v4676_v5, %v6639_v2  ;;  %v5500_v25 = vrot.slane %v5478_v39, %v6639_v2 }
 0x1e1   :  { %v1903_v46 = vrot.slane %v7562_v56, %v6617_v24  ;;  %v5507_v53 = vrot.slane %v5479_v4, %v6639_v2  ;;  %v1907_v57 = vrot.slane %v7562_v56, %v6620_v28  ;;  %v1911_v63 = vrot.slane %v7562_v56, %v6623_v34 }
 0x1e2   :  { %v5508_v30 = vcombine.low %v5486_v6, %v5493_v36  ;;  %v8014_v33 = vadd.f32 %v6611_v18, %v7484_v13  ;;  %v4691_v59 = vcombine.low %v4683_v7, %v4690_v8  ;;  %v1915_v40 = vrot.slane %v7562_v56, %v6626_v42  ;;  %v8042_v8 = vpop.permute.xlu0 %5706 }
 0x1e3   :  { %v1919_v50 = vrot.slane %v7562_v56, %v6629_v43  ;;  %v5509_v41 = vcombine.low %v5500_v25, %v5507_v53  ;;  %v1923_v60 = vrot.slane %v7562_v56, %v6632_v47  ;;  %v1927_v19 = vrot.slane %v7562_v56, %v6635_v48 }
 0x1e4   :  { %v5516_v14 = vrot.slane %v5508_v30, %v6639_v2  ;;  %5802 = vperm.xlu1 %6265, %v4691_v59   ;;  %v4692_v13 = vcombine.low %v1899_v29, %v1903_v46  ;;  %v4693_v27 = vcombine.low %v1907_v57, %v1911_v63  ;;  %v2443_v62 = vrot.slane %v421_v15, %v6614_v23 }
 0x1e5   :  { %v4694_v3 = vcombine.low %v1915_v40, %v1919_v50  ;;  %v5523_v12 = vrot.slane %v5509_v41, %v6639_v2  ;;  %v4695_v20 = vcombine.low %v1923_v60, %v1927_v19  ;;  %v2447_v32 = vrot.slane %v421_v15, %v6617_v24  ;;  %v8051_v50 = vpop.permute.xlu1 %5709 }
 0x1e6   :  { %v2451_v54 = vrot.slane %v421_v15, %v6620_v28  ;;  %v4702_v45 = vrot.slane %v4692_v13, %v6639_v2  ;;  %v4709_v35 = vrot.slane %v4693_v27, %v6639_v2  ;;  %v2455_v49 = vrot.slane %v421_v15, %v6623_v34 }
 0x1e7   :  { %v4716_v56 = vrot.slane %v4694_v3, %v6639_v2  ;;  %v5524_v52 = vcombine.low %v5516_v14, %v5523_v12  ;;  %v4723_v44 = vrot.slane %v4695_v20, %v6639_v2  ;;  %v2459_v5 = vrot.slane %v421_v15, %v6626_v42 }
 0x1e8   :  { %v2463_v7 = vrot.slane %v421_v15, %v6629_v43  ;;  %v4724_v39 = vcombine.low %v4702_v45, %v4709_v35  ;;  %v2467_v4 = vrot.slane %v421_v15, %v6632_v47  ;;  %v2471_v6 = vrot.slane %v421_v15, %v6635_v48 }
 0x1e9   :  { %v5525_v36 = vcombine.low %v2443_v62, %v2447_v32  ;;  %5853 = vperm.xlu0 %6264, %v5524_v52   ;;  %v4725_v25 = vcombine.low %v4716_v56, %v4723_v44  ;;  %v5526_v29 = vcombine.low %v2451_v54, %v2455_v49  ;;  %v422_v63 = vadd.f32 %v6611_v18, %v7979_v55  ;;  %v8068_v32 = vpop.permute.xlu0 %5712 }
 0x1ea   :  { %v5527_v46 = vcombine.low %v2459_v5, %v2463_v7  ;;  %v4732_v53 = vrot.slane %v4724_v39, %v6639_v2  ;;  %v5528_v30 = vcombine.low %v2467_v4, %v2471_v6  ;;  %v1931_v14 = vrot.slane %v8014_v33, %v6614_v23  ;;  %v8080_v6 = vpop.permute.xlu1 %5715 }
 0x1eb   :  { %v5535_v57 = vrot.slane %v5525_v36, %v6639_v2  ;;  %v4739_v59 = vrot.slane %v4725_v25, %v6639_v2  ;;  %v5542_v40 = vrot.slane %v5526_v29, %v6639_v2  ;;  %v1935_v60 = vrot.slane %v8014_v33, %v6617_v24 }
 0x1ec   :  { %v5549_v15 = vrot.slane %v5527_v46, %v6639_v2  ;;  %v5556_v41 = vrot.slane %v5528_v30, %v6639_v2  ;;  %v1939_v19 = vrot.slane %v8014_v33, %v6620_v28  ;;  %v1943_v27 = vrot.slane %v8014_v33, %v6623_v34 }
 0x1ed   :  { %v4740_v55 = vcombine.low %v4732_v53, %v4739_v59  ;;  %v5557_v13 = vcombine.low %v5535_v57, %v5542_v40  ;;  %v1947_v62 = vrot.slane %v8014_v33, %v6626_v42  ;;  %v1951_v12 = vrot.slane %v8014_v33, %v6629_v43 }
 0x1ee   :  { %v5558_v3 = vcombine.low %v5549_v15, %v5556_v41  ;;  %v1955_v20 = vrot.slane %v8014_v33, %v6632_v47  ;;  %v406_v54 = vadd.f32 %v6611_v18, %v7555_v38  ;;  %v1959_v35 = vrot.slane %v8014_v33, %v6635_v48 }
 0x1ef   :  { %5805 = vperm.xlu1 %6265, %v4740_v55   ;;  %v5565_v45 = vrot.slane %v5557_v13, %v6639_v2  ;;  %v4741_v56 = vcombine.low %v1931_v14, %v1935_v60  ;;  %v4742_v52 = vcombine.low %v1939_v19, %v1943_v27  ;;  %v4743_v44 = vcombine.low %v1947_v62, %v1951_v12  ;;  %v8090_v14 = vpop.permute.xlu0 %5718 }
 0x1f0   :  { %v5572_v49 = vrot.slane %v5558_v3, %v6639_v2  ;;  %v2475_v5 = vrot.slane %v422_v63, %v6614_v23  ;;  %v4744_v7 = vcombine.low %v1955_v20, %v1959_v35  ;;  %v2479_v4 = vrot.slane %v422_v63, %v6617_v24  ;;  %8439 = vst [vmem:[#allocation10_spill] sm:$0xff] %v8090_v14 }
 0x1f1   :  { %v4751_v39 = vrot.slane %v4741_v56, %v6639_v2  ;;  %v2483_v38 = vrot.slane %v422_v63, %v6620_v28  ;;  %v4758_v25 = vrot.slane %v4742_v52, %v6639_v2  ;;  %v4765_v33 = vrot.slane %v4743_v44, %v6639_v2 }
 0x1f2   :  { %v5573_v36 = vcombine.low %v5565_v45, %v5572_v49  ;;  %v2487_v29 = vrot.slane %v422_v63, %v6623_v34  ;;  %v4772_v46 = vrot.slane %v4744_v7, %v6639_v2  ;;  %v2491_v53 = vrot.slane %v422_v63, %v6626_v42  ;;  %v8100_v45 = vpop.permute.xlu1 %5721 }
 0x1f3   :  { %v2495_v30 = vrot.slane %v422_v63, %v6629_v43  ;;  %v2499_v57 = vrot.slane %v422_v63, %v6632_v47  ;;  %v4773_v59 = vcombine.low %v4751_v39, %v4758_v25  ;;  %v2503_v40 = vrot.slane %v422_v63, %v6635_v48 }
 0x1f4   :  { %5856 = vperm.xlu0 %6264, %v5573_v36   ;;  %v5574_v15 = vcombine.low %v2475_v5, %v2479_v4  ;;  %v5575_v41 = vcombine.low %v2483_v38, %v2487_v29  ;;  %v4774_v60 = vcombine.low %v4765_v33, %v4772_v46  ;;  %v423_v62 = vadd.f32 %v6611_v18, %v7811_v51  ;;  %v8110_v36 = vpop.permute.xlu0 %5724 }
 0x1f5   :  { %v5576_v19 = vcombine.low %v2491_v53, %v2495_v30  ;;  %v4781_v55 = vrot.slane %v4773_v59, %v6639_v2  ;;  %v5577_v13 = vcombine.low %v2499_v57, %v2503_v40  ;;  %v1963_v20 = vrot.slane %v406_v54, %v6614_v23 }
 0x1f6   :  { %v5584_v27 = vrot.slane %v5574_v15, %v6639_v2  ;;  %v5591_v3 = vrot.slane %v5575_v41, %v6639_v2  ;;  %v4788_v12 = vrot.slane %v4774_v60, %v6639_v2  ;;  %v1967_v49 = vrot.slane %v406_v54, %v6617_v24 }
 0x1f7   :  { %v5598_v63 = vrot.slane %v5576_v19, %v6639_v2  ;;  %v5605_v35 = vrot.slane %v5577_v13, %v6639_v2  ;;  %v1971_v52 = vrot.slane %v406_v54, %v6620_v28  ;;  %v1975_v5 = vrot.slane %v406_v54, %v6623_v34 }
 0x1f8   :  { %v5606_v56 = vcombine.low %v5584_v27, %v5591_v3  ;;  %v4789_v44 = vcombine.low %v4781_v55, %v4788_v12  ;;  %v1979_v51 = vrot.slane %v406_v54, %v6626_v42  ;;  %v1983_v4 = vrot.slane %v406_v54, %v6629_v43 }
 0x1f9   :  { %v5607_v7 = vcombine.low %v5598_v63, %v5605_v35  ;;  %v1987_v38 = vrot.slane %v406_v54, %v6632_v47  ;;  %v407_v25 = vadd.f32 %v6611_v18, %v7513_v61  ;;  %v1991_v33 = vrot.slane %v406_v54, %v6635_v48  ;;  %v8121_v18 = vpop.permute.xlu1 %5727 }
 0x1fa   :  { %v5614_v39 = vrot.slane %v5606_v56, %v6639_v2  ;;  %5808 = vperm.xlu1 %6265, %v4789_v44   ;;  %v4790_v29 = vcombine.low %v1963_v20, %v1967_v49  ;;  %v4791_v46 = vcombine.low %v1971_v52, %v1975_v5  ;;  %v4792_v30 = vcombine.low %v1979_v51, %v1983_v4  ;;  %v8130_v56 = vpop.permute.xlu0 %5730 }
 0x1fb   :  { %v5621_v53 = vrot.slane %v5607_v7, %v6639_v2  ;;  %v2507_v57 = vrot.slane %v423_v62, %v6614_v23  ;;  %v2511_v59 = vrot.slane %v423_v62, %v6617_v24  ;;  %v4793_v40 = vcombine.low %v1987_v38, %v1991_v33 }
 0x1fc   :  { %v4800_v15 = vrot.slane %v4790_v29, %v6639_v2  ;;  %v4807_v41 = vrot.slane %v4791_v46, %v6639_v2  ;;  %v2515_v60 = vrot.slane %v423_v62, %v6620_v28  ;;  %v4814_v54 = vrot.slane %v4792_v30, %v6639_v2 }
 0x1fd   :  { %v5622_v61 = vcombine.low %v5614_v39, %v5621_v53  ;;  %v2519_v19 = vrot.slane %v423_v62, %v6623_v34  ;;  %v2523_v55 = vrot.slane %v423_v62, %v6626_v42  ;;  %v4821_v13 = vrot.slane %v4793_v40, %v6639_v2  ;;  %v8139_v33 = vpop.permute.xlu1 %5733 }
 0x1fe   :  { %v4822_v27 = vcombine.low %v4800_v15, %v4807_v41  ;;  %v2527_v3 = vrot.slane %v423_v62, %v6629_v43  ;;  %v2531_v12 = vrot.slane %v423_v62, %v6632_v47  ;;  %v2535_v63 = vrot.slane %v423_v62, %v6635_v48 }
 0x1ff   :  { %5859 = vperm.xlu0 %6264, %v5622_v61   ;;  %v5623_v20 = vcombine.low %v2507_v57, %v2511_v59  ;;  %v5624_v35 = vcombine.low %v2515_v60, %v2519_v19  ;;  %v4823_v49 = vcombine.low %v4814_v54, %v4821_v13  ;;  %v1995_v38 = vrot.slane %v407_v25, %v6614_v23 }
 0x200   :  { %v4830_v52 = vrot.slane %v4822_v27, %v6639_v2  ;;  %v5625_v44 = vcombine.low %v2523_v55, %v2527_v3  ;;  %v5626_v5 = vcombine.low %v2531_v12, %v2535_v63  ;;  %v1999_v62 = vrot.slane %v407_v25, %v6617_v24  ;;  %v8148_v24 = vpop.permute.xlu0 %5736 }
 0x201   :  { %v5633_v51 = vrot.slane %v5623_v20, %v6639_v2  ;;  %v5640_v7 = vrot.slane %v5624_v35, %v6639_v2  ;;  %v4837_v39 = vrot.slane %v4823_v49, %v6639_v2  ;;  %v2003_v53 = vrot.slane %v407_v25, %v6620_v28  ;;  %v8155_v13 = vpop.permute.xlu1 %5739 }
 0x202   :  { %v5647_v4 = vrot.slane %v5625_v44, %v6639_v2  ;;  %v5654_v29 = vrot.slane %v5626_v5, %v6639_v2  ;;  %v2007_v57 = vrot.slane %v407_v25, %v6623_v34  ;;  %v2011_v59 = vrot.slane %v407_v25, %v6626_v42 }
 0x203   :  { %v5655_v46 = vcombine.low %v5633_v51, %v5640_v7  ;;  %v4838_v30 = vcombine.low %v4830_v52, %v4837_v39  ;;  %v2015_v40 = vrot.slane %v407_v25, %v6629_v43  ;;  %v2019_v23 = vrot.slane %v407_v25, %v6632_v47 }
 0x204   :  { %v5656_v15 = vcombine.low %v5647_v4, %v5654_v29  ;;  %v2023_v60 = vrot.slane %v407_v25, %v6635_v48  ;;  %v4839_v61 = vcombine.low %v1995_v38, %v1999_v62  ;;  %v4840_v54 = vcombine.low %v2003_v53, %v2007_v57  ;;  %v8158_v48 = vpop.permute.xlu0 %5742 }
 0x205   :  { %v5663_v41 = vrot.slane %v5655_v46, %v6639_v2  ;;  %5811 = vperm.xlu1 %6265, %v4838_v30   ;;  %v4841_v28 = vcombine.low %v2011_v59, %v2015_v40  ;;  %v8162_v20 = vpop.permute.xlu1 %5745  ;;  %v5865_v35 = vand.u32 127, %v8433_v0 }
 0x206   :  { %v5670_v19 = vrot.slane %v5656_v15, %v6639_v2  ;;  %v4842_v34 = vcombine.low %v2019_v23, %v2023_v60  ;;  %v4849_v42 = vrot.slane %v4839_v61, %v6639_v2  ;;  %v4856_v43 = vrot.slane %v4840_v54, %v6639_v2 }
 0x207   :  { %v4863_v55 = vrot.slane %v4841_v28, %v6639_v2  ;;  %v5870_v52 = vadd.s32 4294967288, %v5865_v35  ;;  %v5877_v5 = vadd.s32 4294967280, %v5865_v35  ;;  %v5884_v51 = vadd.s32 4294967272, %v5865_v35 }
 0x208   :  { %v5671_v47 = vcombine.low %v5663_v41, %v5670_v19  ;;  %v4870_v27 = vrot.slane %v4842_v34, %v6639_v2  ;;  %v4871_v3 = vcombine.low %v4849_v42, %v4856_v43  ;;  %v8165_v44 = vpop.permute.xlu0 %5748  ;;  %v5891_v7 = vadd.s32 4294967264, %v5865_v35 }
 0x209   :  { %v5926_v39 = vadd.s32 4294967224, %v5865_v35  ;;  %v8168_v4 = vsub.s32 %v5865_v35, %v6606_v17  ;;  %v8170_v38 = vpop.permute.xlu1 %5751  ;;  %v8173_v62 = vsub.s32 %v5870_v52, %v6606_v17  ;;  %v5905_v29 = vadd.s32 4294967248, %v5865_v35 }
 0x20a   :  { %5862 = vperm.xlu0 %6264, %v5671_v47   ;;  %v4872_v25 = vcombine.low %v4863_v55, %v4870_v27  ;;  %v4879_v12 = vrot.slane %v4871_v3, %v6639_v2  ;;  %v8176_v46 = vsub.s32 %v5877_v5, %v6606_v17  ;;  %v8179_v53 = vsub.s32 %v5884_v51, %v6606_v17 }
 0x20b   :  { %v5898_v30 = vadd.s32 4294967256, %v5865_v35  ;;  %v8182_v57 = vsub.s32 %v5891_v7, %v6606_v17  ;;  %v8185_v59 = vsub.s32 %v5926_v39, %v6606_v17  ;;  %v5919_v40 = vadd.s32 4294967232, %v5865_v35 }
 0x20c   :  { %v4886_v63 = vrot.slane %v4872_v25, %v6639_v2  ;;  %v5755_v15 = vpop.permute.xlu0 %5754  ;;  %v5940_v41 = vadd.s32 4294967208, %v5865_v35  ;;  %v5912_v23 = vadd.s32 4294967240, %v5865_v35  ;;  %v5982_v60 = vrot.slane %v8110_v36, %v8173_v62 }
 0x20d   :  { %v5978_v61 = vrot.slane %v8100_v45, %v8168_v4  ;;  %v8192_v54 = vsub.s32 %v5905_v29, %v6606_v17  ;;  %v5933_v28 = vadd.s32 4294967216, %v5865_v35  ;;  %v5987_v19 = vrot.slane %v8121_v18, %v8176_v46  ;;  %v5758_v45 = vpop.permute.xlu1 %5757 }
 0x20e   :  { %v4887_v49 = vcombine.low %v4879_v12, %v4886_v63  ;;  %v8197_v34 = vsub.s32 %v5898_v30, %v6606_v17  ;;  %v5992_v42 = vrot.slane %v8130_v56, %v8179_v53  ;;  %v5997_v36 = vrot.slane %v8139_v33, %v8182_v57 }
 0x20f   :  { %v5983_v43 = vsel %vm5875_vm1, %v5982_v60, %v5978_v61  ;;  %v8205_v55 = vsub.s32 %v5919_v40, %v6606_v17  ;;  %v5947_v47 = vadd.s32 4294967200, %v5865_v35  ;;  %v6007_v18 = vrot.slane %v8155_v13, %v8192_v54 }
 0x210   :  { %5814 = vperm.xlu1 %6265, %v4887_v49   ;;  %v5988_v27 = vsel %vm5882_vm2, %v5987_v19, %v5983_v43  ;;  %v8211_v3 = vsub.s32 %v5940_v41, %v6606_v17  ;;  %v8214_v56 = vsub.s32 %v5912_v23, %v6606_v17  ;;  %v6002_v25 = vrot.slane %v8148_v24, %v8197_v34  ;;  %v5761_v52 = vpop.permute.xlu0 %5760 }
 0x211   :  { %v5993_v33 = vsel %vm5889_vm3, %v5992_v42, %v5988_v27  ;;  %v8220_v12 = vsub.s32 %v5933_v28, %v6606_v17  ;;  %v5961_v63 = vadd.s32 4294967184, %v5865_v35  ;;  %v6017_v13 = vrot.slane %v8162_v20, %v8205_v55  ;;  %v5764_v41 = vpop.permute.xlu1 %5763 }
 0x212   :  { %v5998_v49 = vsel %vm5896_vm4, %v5997_v36, %v5993_v33  ;;  %v5954_v5 = vadd.s32 4294967192, %v5865_v35  ;;  %v6012_v51 = vrot.slane %v8158_v48, %v8214_v56  ;;  %v8229_v24 = vsub.s32 %v5947_v47, %v6606_v17 }
 0x213   :  { %v6003_v7 = vsel %vm5903_vm5, %v6002_v25, %v5998_v49  ;;  %v6027_v29 = vrot.slane %v8170_v38, %v8220_v12  ;;  %v5968_v30 = vadd.s32 4294967176, %v5865_v35  ;;  %v6022_v20 = vrot.slane %v8165_v44, %v8185_v59 }
 0x214   :  { %v6008_v39 = vsel %vm5910_vm6, %v6007_v18, %v6003_v7  ;;  %v8238_v48 = vsub.s32 %v5961_v63, %v6606_v17  ;;  %v6037_v60 = vrot.slane %v5758_v45, %v8229_v24  ;;  %v8243_v61 = vsub.s32 %v5954_v5, %v6606_v17  ;;  %v5767_v44 = vpop.permute.xlu0 %5766 }
 0x215   :  { %v6013_v40 = vsel %vm5917_vm7, %v6012_v51, %v6008_v39  ;;  %v6032_v35 = vrot.slane %v5755_v15, %v8211_v3  ;;  %v8250_v42 = vsub.s32 %v5968_v30, %v6606_v17  ;;  %v5770_v25 = vpop.permute.xlu1 %5769  ;;  %v5895_v2 = vrot.slane %v7907_v26, %v8182_v57 }
 0x216   :  { %v6018_v23 = vsel %vm5924_vm8, %v6017_v13, %v6013_v40  ;;  %v6047_v19 = vrot.slane %v5764_v41, %v8238_v48  ;;  %v6042_v43 = vrot.slane %v5761_v52, %v8243_v61 }
 0x217   :  { %v6023_v38 = vsel %vm5931_vm9, %v6022_v20, %v6018_v23  ;;  %8440 = vst [vmem:[#allocation11_spill] sm:$0xff] %v8250_v42  ;;  %v6052_v15 = vrot.slane %v5767_v44, %v8250_v42 }
 0x218   :  { %v6028_v28 = vsel %vm5938_vm10, %v6027_v29, %v6023_v38  ;;  %v5773_v17 = vpop.permute.xlu0 %5772 }
 0x219   :  { %v6033_v36 = vsel %vm5945_vm11, %v6032_v35, %v6028_v28  ;;  %v5776_v63 = vpop.permute.xlu1 %5775 }
 0x21a   :  { %v6038_v45 = vsel %vm5952_vm12, %v6037_v60, %v6033_v36 }
 0x21b   :  { %v6043_v47 = vsel %vm5959_vm13, %v6042_v43, %v6038_v45  ;;  %v5874_v43 = vrot.slane %v7831_v21, %v8173_v62  ;;  %v5881_v45 = vrot.slane %v7860_v58, %v8176_v46  ;;  %v5902_v58 = vrot.slane %v7933_v16, %v8197_v34 }
 0x21c   :  { %v6048_v27 = vsel %vm5966_vm14, %v6047_v19, %v6043_v47  ;;  %v8261_v33 = vpop.permute.xlu0 %5778  ;;  %v5869_v47 = vrot.slane %v7993_v11, %v8168_v4  ;;  %v6061_v16 = vrot.slane %v5773_v17, %v8173_v62 }
 0x21d   :  { %v8259_v18 = vsel %vm5973_vm15, %v6052_v15, %v6048_v27  ;;  %v8265_v52 = vpop.permute.xlu1 %5781  ;;  %v5888_v27 = vrot.slane %v7885_v1, %v8179_v53  ;;  %v6066_v1 = vrot.slane %v5776_v63, %v8176_v46  ;;  %v5923_v63 = vrot.slane %v7999_v9, %v8205_v55 }
 0x21e   :  { %8441 = vst [vmem:[#allocation12_spill] sm:$0xff] %v8259_v18  ;;  %v5876_v21 = vsel %vm5875_vm1, %v5874_v43, %v5869_v47  ;;  %v5909_v43 = vrot.slane %v7950_v37, %v8192_v54 }
 0x21f   :  { %v5883_v11 = vsel %vm5882_vm2, %v5881_v45, %v5876_v21  ;;  %v5930_v45 = vrot.slane %v8020_v10, %v8185_v59 }
 0x220   :  { %v8263_v49 = vpop.permute.xlu0 %5784  ;;  %v5890_v42 = vsel %vm5889_vm3, %v5888_v27, %v5883_v11 }
 0x221   :  { %v8269_v5 = vpop.permute.xlu1 %5787 }
 0x224   :  { %v8267_v13 = vpop.permute.xlu0 %5790 }
 0x225   :  { %v8273_v7 = vpop.permute.xlu1 %5793 }
 0x228   :  { %v8271_v51 = vpop.permute.xlu0 %5796 }
 0x229   :  { %v5818_v29 = vpop.permute.xlu1 %5817 }
 0x22a   :  { %v6136_v36 = vrot.slane %v5818_v29, %v8168_v4  ;;  %v6057_v29 = vrot.slane %v5770_v25, %v8168_v4 }
 0x22c   :  { %v5821_v39 = vpop.permute.xlu0 %5820 }
 0x22d   :  { %v6140_v0 = vrot.slane %v5821_v39, %v8173_v62  ;;  %v6076_v62 = vrot.slane %v8265_v52, %v8182_v57 }
 0x230   :  { %v5827_v30 = vpop.permute.xlu0 %5826 }
 0x231   :  { %v6150_v4 = vrot.slane %v5827_v30, %v8179_v53  ;;  %v6071_v30 = vrot.slane %v8261_v33, %v8179_v53  ;;  %v6086_v53 = vrot.slane %v8269_v5, %v8192_v54 }
 0x233   :  { %v5824_v20 = vpop.permute.xlu1 %5823 }
 0x234   :  { %v5833_v40 = vpop.permute.xlu0 %5832  ;;  %v6145_v15 = vrot.slane %v5824_v20, %v8176_v46  ;;  %v6141_v20 = vsel %vm5875_vm1, %v6140_v0, %v6136_v36  ;;  %v5897_v0 = vsel %vm5896_vm4, %v5895_v2, %v5890_v42  ;;  %v5916_v46 = vrot.slane %v7977_v22, %v8214_v56 }
 0x235   :  { %v5904_v25 = vsel %vm5903_vm5, %v5902_v58, %v5897_v0  ;;  %v6160_v9 = vrot.slane %v5833_v40, %v8197_v34  ;;  %v6081_v40 = vrot.slane %v8263_v49, %v8197_v34 }
 0x236   :  { %v6146_v39 = vsel %vm5882_vm2, %v6145_v15, %v6141_v20  ;;  %v5911_v22 = vsel %vm5910_vm6, %v5909_v43, %v5904_v25 }
 0x237   :  { %v6151_v36 = vsel %vm5889_vm3, %v6150_v4, %v6146_v39  ;;  %v5918_v15 = vsel %vm5917_vm7, %v5916_v46, %v5911_v22 }
 0x238   :  { %v5839_v23 = vpop.permute.xlu0 %5838 }
 0x239   :  { %v6170_v21 = vrot.slane %v5839_v23, %v8214_v56  ;;  %v5944_v23 = vrot.slane %v8042_v8, %v8211_v3 }
 0x23d   :  { %v5830_v41 = vpop.permute.xlu1 %5829 }
 0x23e   :  { %v6155_v14 = vrot.slane %v5830_v41, %v8182_v57  ;;  %v6062_v41 = vsel %vm5875_vm1, %v6061_v16, %v6057_v29  ;;  %v5925_v57 = vsel %vm5924_vm8, %v5923_v63, %v5918_v15 }
 0x23f   :  { %v6067_v37 = vsel %vm5882_vm2, %v6066_v1, %v6062_v41  ;;  %v6091_v1 = vrot.slane %v8267_v13, %v8214_v56 }
 0x240   :  { %v6156_v17 = vsel %vm5896_vm4, %v6155_v14, %v6151_v36  ;;  %v5937_v14 = vrot.slane %v8031_v31, %v8220_v12  ;;  %v6072_v52 = vsel %vm5889_vm3, %v6071_v30, %v6067_v37  ;;  %v5932_v31 = vsel %vm5931_vm9, %v5930_v45, %v5925_v57  ;;  %v8443_v36 = vld [vmem:[#allocation10_spill] sm:$0xff]  ;;  %v8444_v45 = vld [vmem:[#allocation12_spill] sm:$0xff] }
 0x241   :  { %v6077_v27 = vsel %vm5896_vm4, %v6076_v62, %v6072_v52 }
 0x242   :  { %v5939_v29 = vsel %vm5938_vm10, %v5937_v14, %v5932_v31  ;;  %v6082_v20 = vsel %vm5903_vm5, %v6081_v40, %v6077_v27  ;;  %v8445_v27 = vld [vmem:[#allocation9_spill] sm:$0xff]  ;;  %v8446_v40 = vlaneseq }
 0x243   :  { %v8275_v35 = vpop.permute.xlu0 %5844  ;;  %v6087_v5 = vsel %vm5910_vm6, %v6086_v53, %v6082_v20  ;;  %v5946_v43 = vsel %vm5945_vm11, %v5944_v23, %v5939_v29 }
 0x244   :  { %v6180_v39 = vrot.slane %v8275_v35, %v8185_v59  ;;  %v6092_v16 = vsel %vm5917_vm7, %v6091_v1, %v6087_v5  ;;  %v5958_v35 = vrot.slane %v8068_v32, %v8243_v61  ;;  %vm6239_vm0 = vcmp.lt.s32.totalorder %v8446_v40, 512 }
 0x248   :  { %v5836_v60 = vpop.permute.xlu1 %5835 }
 0x249   :  { %v6165_v2 = vrot.slane %v5836_v60, %v8192_v54  ;;  %v6161_v60 = vsel %vm5903_vm5, %v6160_v9, %v6156_v17  ;;  %v5951_v54 = vrot.slane %v8051_v50, %v8229_v24  ;;  %v5965_v50 = vrot.slane %v8080_v6, %v8238_v48 }
 0x24a   :  { %v6101_v6 = vrot.slane %v8271_v51, %v8185_v59 }
 0x24b   :  { %v6166_v33 = vsel %vm5910_vm6, %v6165_v2, %v6161_v60 }
 0x24c   :  { %v6171_v11 = vsel %vm5917_vm7, %v6170_v21, %v6166_v33 }
 0x24e   :  { %v8277_v38 = vpop.permute.xlu1 %5841 }
 0x24f   :  { %v6175_v10 = vrot.slane %v8277_v38, %v8205_v55  ;;  %v6096_v38 = vrot.slane %v8273_v7, %v8205_v55  ;;  %v5953_v7 = vsel %vm5952_vm12, %v5951_v54, %v5946_v43 }
 0x250   :  { %v5960_v63 = vsel %vm5959_vm13, %v5958_v35, %v5953_v7 }
 0x251   :  { %v6176_v34 = vsel %vm5924_vm8, %v6175_v10, %v6171_v11  ;;  %v6097_v4 = vsel %vm5924_vm8, %v6096_v38, %v6092_v16 }
 0x252   :  { %v6181_v55 = vsel %vm5931_vm9, %v6180_v39, %v6176_v34  ;;  %v6102_v32 = vsel %vm5931_vm9, %v6101_v6, %v6097_v4 }
 0x253   :  { %v8279_v44 = vpop.permute.xlu0 %5847 }
 0x254   :  { %v6185_v8 = vrot.slane %v8279_v44, %v8220_v12 }
 0x256   :  { %v6186_v25 = vsel %vm5938_vm10, %v6185_v8, %v6181_v55 }
 0x258   :  { %v8281_v28 = vpop.permute.xlu1 %5799 }
 0x259   :  { %v6106_v56 = vrot.slane %v8281_v28, %v8220_v12 }
 0x25e   :  { %v8283_v19 = vpop.permute.xlu0 %5850 }
 0x25f   :  { %v6190_v0 = vrot.slane %v8283_v19, %v8211_v3  ;;  %v5967_v19 = vsel %vm5966_vm14, %v5965_v50, %v5960_v63 }
 0x261   :  { %v6191_v37 = vsel %vm5945_vm11, %v6190_v0, %v6186_v25 }
 0x263   :  { %v8298_v18 = vpop.permute.xlu1 %5802 }
 0x264   :  { %v6111_v46 = vrot.slane %v8298_v18, %v8211_v3  ;;  %v6107_v3 = vsel %vm5938_vm10, %v6106_v56, %v6102_v32 }
 0x266   :  { %v6112_v62 = vsel %vm5945_vm11, %v6111_v46, %v6107_v3 }
 0x268   :  { %v8309_v26 = vpop.permute.xlu0 %5853 }
 0x269   :  { %v6195_v44 = vrot.slane %v8309_v26, %v8229_v24  ;;  %v8442_v26 = vld [vmem:[#allocation11_spill] sm:$0xff] }
 0x26b   :  { %v6196_v2 = vsel %vm5952_vm12, %v6195_v44, %v6191_v37 }
 0x26e   :  { %v5806_v42 = vpop.permute.xlu1 %5805 }
 0x26f   :  { %v6116_v12 = vrot.slane %v5806_v42, %v8229_v24  ;;  %v5972_v24 = vrot.slane %v8443_v36, %v8442_v26 }
 0x271   :  { %v5974_v22 = vsel %vm5973_vm15, %v5972_v24, %v5967_v19 }
 0x272   :  { %v6212_v15 = vcombine.low %v5974_v22, %v8444_v45 }
 0x273   :  { %v5857_v47 = vpop.permute.xlu0 %5856 }
 0x274   :  { %v6200_v59 = vrot.slane %v5857_v47, %v8243_v61  ;;  %v6220_v33 = vrot.slane %v6212_v15, %v8445_v27 }
 0x276   :  { %v6201_v30 = vsel %vm5959_vm13, %v6200_v59, %v6196_v2 }
 0x279   :  { %v5809_v58 = vpop.permute.xlu1 %5808 }
 0x27a   :  { %v6121_v51 = vrot.slane %v5809_v58, %v8243_v61  ;;  %v6117_v61 = vsel %vm5952_vm12, %v6116_v12, %v6112_v62 }
 0x27e   :  { %v5860_v49 = vpop.permute.xlu0 %5859 }
 0x27f   :  { %v6205_v18 = vrot.slane %v5860_v49, %v8238_v48 }
 0x281   :  { %v6206_v47 = vsel %vm5966_vm14, %v6205_v18, %v6201_v30 }
 0x284   :  { %v5812_v13 = vpop.permute.xlu1 %5811 }
 0x285   :  { %v6126_v41 = vrot.slane %v5812_v13, %v8238_v48  ;;  %v6122_v48 = vsel %vm5959_vm13, %v6121_v51, %v6117_v61 }
 0x287   :  { %v6127_v57 = vsel %vm5966_vm14, %v6126_v41, %v6122_v48 }
 0x289   :  { %v5863_v28 = vpop.permute.xlu0 %5862 }
 0x28a   :  { %v6210_v17 = vrot.slane %v5863_v28, %v8442_v26 }
 0x28c   :  { %v6211_v14 = vsel %vm5973_vm15, %v6210_v17, %v6206_v47 }
 0x28f   :  { %v5815_v42 = vpop.permute.xlu1 %5814 }
 0x290   :  { %v6131_v9 = vrot.slane %v5815_v42, %v8442_v26 }
 0x292   :  { %v6132_v52 = vsel %vm5973_vm15, %v6131_v9, %v6127_v57 }
 0x293   :  { %v6213_v60 = vcombine.low %v6132_v52, %v6211_v14 }
 0x295   :  { %v6227_v53 = vrot.slane %v6213_v60, %v8445_v27 }
 0x297   :  { %v6228_v10 = vcombine.low %v6220_v33, %v6227_v53 }
 0x299   :  { %v6235_v21 = vrot.slane %v6228_v10, %v8445_v27 }
 0x29b   :  { %6241 = vst.msk [vmem:[#allocation6] sm:$0xf] %vm6239_vm0, %v6235_v21 }
 0x29c   :  { %6299 = shalt.err (!%p6296_p12)
}
 0x29d   :  { %s6300_s6 = scalar_lea.hbm %s8432_s3, 64 }
 0x29e   :  { %p6301_p13 = scmp.ne.s32.totalorder %s8432_s3, %s6300_s6  ;;  %p6304_p0 = scmp.lt.u32.totalorder %s6300_s6, %s8432_s3 }
 0x2a0   :  { %p6306_p1 = pnand %p6304_p0, %p6301_p13 }
 0x2a2   :  { %6309 = shalt.err (!%p6306_p1)
}
 0x2a3   :  { %6251 = dma.vmem_to_hbm [thread:$0]  %s6249_s29, 64, %s8432_s3, [#allocation5]  }
 0x2a4   :  { %6312 = dma.done.wait [#allocation5], 64  }
 0x2a5   :  { %6313 = vsyncadd [#allocation5], 4294967232 }
 0x2a6   :  { %6255 = vsyncpa [#allocation4], 1 }
 0x2a7   :  { %6256 = vsyncpa [#allocation5], 1 }

</bundles_post_ra>
